<compile_context>
chip_gen: v7x
topology: tpu7x:2x2x1
jax: 0.10.0
libtpu: 0.0.40
codegen_flags: <defaults>
</compile_context>

<pallas_src>
import jax
import jax.numpy as jnp
from jax.experimental import pallas as pl
from jax.experimental.pallas import tpu as pltpu


def _round_up(x, m):
    return (x + m - 1) // m * m


def _vmem_capacity_bytes():
    """Physical VMEM per TensorCore; conservative fallback if the query fails."""
    try:
        return int(pltpu.get_tpu_info().vmem_capacity_bytes)
    except Exception:
        return 64 * 1024 * 1024  # v7x per-core VMEM (smallest of the targets)


def _plan_td_tiling(td, k, x_itemsize, weight_bytes, vmem_cap, max_tile_bytes=None):
    """Pick (td_tile, td_pad, n_splits) for streaming the fused T*D axis.

    The frame tile is double-buffered by Pallas, so the budget accounts for 2x
    the tile plus the resident folded weight (counted twice in case the
    single-buffer request on it is not honored).
    """
    if max_tile_bytes is None:
        usable = max(vmem_cap // 2 - 2 * weight_bytes - (2 << 20), 64 * 1024)
        max_tile_bytes = min(8 << 20, usable // 2)   # per frame buffer
    max_rows = max(8, (max_tile_bytes // (k * x_itemsize)) // 8 * 8)

    if td <= max_rows:
        td_tile = td if td % 8 == 0 else _round_up(td, 8)
    else:
        td_tile = None
        for cand in range(8, max_rows + 1, 8):       # largest exact divisor
            if td % cand == 0:
                td_tile = cand
        if td_tile is None:
            td_tile = max_rows                        # ragged: pad + -inf mask
    td_pad = _round_up(td, td_tile)
    n_tiles = td_pad // td_tile
    n_splits = 2 if (n_tiles >= 2 and n_tiles % 2 == 0) else 1
    return td_tile, td_pad, n_splits


def _scene_max_pallas(x, sw, *, td_true, td_tile, n_splits, vmem_limit_bytes,
                      weight_pipeline_mode=None):
    """Streaming scene-detector matmul + running max over the fused T*D axis.

    x:  (N, TD_pad, K) bf16 frames, C*H*W flattened on lanes.
    sw: (K, S_pad)     bf16 pool-folded scene weight.
    Returns (n_splits, N, 1, S_pad) f32 partial maxima (pre-bias, pre-ReLU).
    """
    n, td_pad, k = x.shape
    s_pad = sw.shape[1]
    tiles_per_split = td_pad // (td_tile * n_splits)
    needs_mask = td_pad != td_true

    def kernel(x_ref, sw_ref, out_ref, max_ref):
        t = pl.program_id(2)

        @pl.when(t == 0)
        def _init():
            max_ref[...] = jnp.full(max_ref.shape, -jnp.inf, dtype=jnp.float32)

        # Native MXU bf16 x bf16 -> f32; no f32 copy of the frame tile.
        scene = jnp.dot(x_ref[...], sw_ref[...],
                        preferred_element_type=jnp.float32)      # (td_tile, S_pad)

        if needs_mask:
            # Rows past the true T*D length are zero padding -> force them to
            # -inf so they can never win the running max.
            row0 = (pl.program_id(0) * tiles_per_split + t) * td_tile
            rows = row0 + jax.lax.broadcasted_iota(jnp.int32, (td_tile, 1), 0)
            scene = jnp.where(rows < td_true, scene, -jnp.inf)

        max_ref[...] = jnp.maximum(max_ref[...],
                                   jnp.max(scene, axis=0, keepdims=True))

        @pl.when(t == pl.num_programs(2) - 1)
        def _finalize():
            out_ref[...] = max_ref[...]

    sw_kwargs = {}
    if weight_pipeline_mode is not None:
        sw_kwargs["pipeline_mode"] = weight_pipeline_mode

    in_specs = [
        # Frames: stream td_tile rows per step; leading N dim squeezed away.
        pl.BlockSpec((None, td_tile, k),
                     lambda s, b, t: (b, s * tiles_per_split + t, 0)),
        # Folded weight: whole array, constant index -> resident across grid.
        pl.BlockSpec((k, s_pad), lambda s, b, t: (0, 0), **sw_kwargs),
    ]
    # Output row stays resident across the (arbitrary) t axis; written once.
    out_specs = pl.BlockSpec((None, None, 1, s_pad), lambda s, b, t: (s, b, 0, 0))

    cost = pl.CostEstimate(
        flops=2 * n * td_pad * k * s_pad,
        transcendentals=0,
        bytes_accessed=int(x.size) * x.dtype.itemsize
        + int(sw.size) * sw.dtype.itemsize
        + n_splits * n * s_pad * 4,
    )

    return pl.pallas_call(
        kernel,
        out_shape=jax.ShapeDtypeStruct((n_splits, n, 1, s_pad), jnp.float32),
        grid_spec=pltpu.PrefetchScalarGridSpec(
            num_scalar_prefetch=0,
            grid=(n_splits, n, tiles_per_split),
            in_specs=in_specs,
            out_specs=out_specs,
            scratch_shapes=[pltpu.VMEM((1, s_pad), jnp.float32)],
        ),
        compiler_params=pltpu.CompilerParams(
            dimension_semantics=("parallel", "parallel", "arbitrary"),
            vmem_limit_bytes=vmem_limit_bytes,
        ),
        cost_estimate=cost,
    )(x, sw)


def event_model_forward(frames, scene_w, scene_b, event_w, event_b,
                        *, max_tile_bytes=None):
    """Event_Model.forward: scene detector (stand-in) -> max over D -> max over T
    -> ReLU -> Dropout (eval: identity) -> final Linear.

    frames:  (N, T, D, C, H, W), ideally already bf16 from the producer.
    scene_w: (C, S) stand-in scene-detector linear weight (applied after GAP).
    event_w: (S, E) final classifier weight, used as feat @ event_w.
    """
    N, T, D, C, H, W = frames.shape
    HW = H * W
    TD, K = T * D, C * HW
    S = scene_w.shape[1]
    S_pad = _round_up(S, 128)

    # Producers should hand us bf16 frames so no extra full-array HBM cast pass
    # happens here; cast only if they do not.
    x = frames.reshape(N, TD, K)
    if x.dtype != jnp.bfloat16:
        x = x.astype(jnp.bfloat16)

    # Fold the global average pool into the scene weight (mean-then-matmul ==
    # flat matmul with w/HW), pad S to a lane-dense multiple of 128, keep bf16.
    sw = jnp.broadcast_to((scene_w.astype(jnp.float32) / float(HW))[:, None, :],
                          (C, HW, S)).reshape(K, S)
    sw = jnp.pad(sw, ((0, 0), (0, S_pad - S))).astype(jnp.bfloat16)

    vmem_cap = _vmem_capacity_bytes()
    weight_bytes = K * S_pad * 2
    td_tile, td_pad, n_splits = _plan_td_tiling(TD, K, 2, weight_bytes,
                                                vmem_cap, max_tile_bytes)
    if td_pad != TD:
        x = jnp.pad(x, ((0, 0), (0, td_pad - TD), (0, 0)))

    needed = (2 * td_tile * K * 2          # double-buffered frame tile
              + 2 * weight_bytes           # folded weight (worst case 2 buffers)
              + 4 * S_pad * 4              # output block + running-max scratch
              + (2 << 20))                 # compiler scratch headroom
    vmem_limit = int(min(vmem_cap, max(needed + (8 << 20), 32 << 20)))

    kwargs = dict(td_true=TD, td_tile=td_tile, n_splits=n_splits,
                  vmem_limit_bytes=vmem_limit)
    part = None
    if hasattr(pl, "Buffered"):
        try:
            # Constant-index weight block: single-buffer it to halve its VMEM.
            part = _scene_max_pallas(x, sw, weight_pipeline_mode=pl.Buffered(1),
                                     **kwargs)
        except Exception:
            part = None   # fall back to default pipelining below
    if part is None:
        part = _scene_max_pallas(x, sw, **kwargs)

    # Tiny XLA epilogue: combine split maxima, add the scene bias (constant over
    # T*D, so adding after the max is exact), ReLU, eval-mode Dropout (identity),
    # then the (N, S) @ (S, E) final classifier.
    feat = jnp.max(part[:, :, 0, :], axis=0)[:, :S] + scene_b.astype(jnp.float32)
    feat = jnp.maximum(feat, 0.0)
    return feat @ event_w.astype(jnp.float32) + event_b.astype(jnp.float32)


def event_model_reference(frames, scene_w, scene_b, event_w, event_b,
                          *, quantize_like_kernel=False):
    """Pure-JAX reference mirroring the PyTorch forward (f32 math).

    With quantize_like_kernel=True the folded scene weight is quantized to bf16
    exactly like the kernel operand (pass bf16 frames for a matched check).
    """
    N, T, D, C, H, W = frames.shape
    HW = H * W
    S = scene_w.shape[1]
    x = frames.astype(jnp.float32).reshape(N * T * D, C * HW)
    if quantize_like_kernel:
        wf = jnp.broadcast_to((scene_w.astype(jnp.float32) / HW)[:, None, :],
                              (C, HW, S)).reshape(C * HW, S)
        wf = wf.astype(jnp.bfloat16).astype(jnp.float32)
        scene = x @ wf
    else:
        pooled = x.reshape(-1, C, HW).mean(axis=-1)
        scene = pooled @ scene_w.astype(jnp.float32)
    scene = (scene + scene_b).reshape(N, T, D, S)
    scene = scene.max(axis=2).max(axis=1)
    feat = jnp.maximum(scene, 0.0)   # ReLU; Dropout(0.5) is identity in eval mode
    return feat @ event_w.astype(jnp.float32) + event_b.astype(jnp.float32)


if __name__ == "__main__":
    key = jax.random.PRNGKey(0)
    k_f1, k_f2, k_sw, k_sb, k_ew = jax.random.split(key, 5)

    C, H, W = 8, 16, 16
    SCENE_CLASSES, EVENT_CLASSES = 32, 8

    # Scene-detector stand-in (GAP -> Linear) params.
    scene_w = 0.5 * jax.random.normal(k_sw, (C, SCENE_CLASSES), dtype=jnp.float32)
    scene_b = 0.1 * jax.random.normal(k_sb, (SCENE_CLASSES,), dtype=jnp.float32)
    # final_classifier: nn.Linear(scene_classes, event_classes),
    # weight ~ N(0, 0.01), bias = 0 (as in Event_Model.__init__).
    event_w = 0.01 * jax.random.normal(
        k_ew, (SCENE_CLASSES, EVENT_CLASSES), dtype=jnp.float32)
    event_b = jnp.zeros((EVENT_CLASSES,), dtype=jnp.float32)

    # --- Config A: tiny clip, T*D = 6 (exercises the pad + -inf mask path). ---
    N, T, D = 2, 3, 2
    frames_f32 = jax.random.normal(k_f1, (N, T, D, C, H, W), dtype=jnp.float32)
    frames = frames_f32.astype(jnp.bfloat16)      # producer-supplied bf16 frames

    out = event_model_forward(frames, scene_w, scene_b, event_w, event_b)
    out = jax.block_until_ready(out)
    assert out.shape == (N, EVENT_CLASSES)

    ref_matched = event_model_reference(frames, scene_w, scene_b, event_w,
                                        event_b, quantize_like_kernel=True)
    assert jnp.allclose(out, ref_matched, atol=1e-5, rtol=1e-3), \
        "config A: mismatch vs bf16-matched reference"
    ref_f32 = event_model_reference(frames_f32, scene_w, scene_b, event_w, event_b)
    assert jnp.allclose(out, ref_f32, atol=5e-4, rtol=5e-2), \
        "config A: mismatch vs f32 reference"

    # --- Config B: longer clip with a tiny forced tile budget so the kernel
    #     streams T*D tiles and splits them across two parallel grid rows. ---
    N2, T2, D2 = 1, 8, 8
    frames2 = jax.random.normal(k_f2, (N2, T2, D2, C, H, W),
                                dtype=jnp.float32).astype(jnp.bfloat16)
    out2 = event_model_forward(frames2, scene_w, scene_b, event_w, event_b,
                               max_tile_bytes=64 * 1024)
    out2 = jax.block_until_ready(out2)
    assert out2.shape == (N2, EVENT_CLASSES)
    ref2 = event_model_reference(frames2, scene_w, scene_b, event_w, event_b,
                                 quantize_like_kernel=True)
    assert jnp.allclose(out2, ref2, atol=1e-5, rtol=1e-3), \
        "config B: mismatch vs bf16-matched reference"

    print("KERNEL_OK")
</pallas_src>

<mosaic_0001>
module attributes {stable_mosaic.version = 11 : i64} {
  func.func @kernel(%arg0: i32, %arg1: i32, %arg2: i32, %arg3: memref<1x8x2048xbf16, #tpu.memory_space<vmem>>, %arg4: memref<2048x128xbf16, #tpu.memory_space<vmem>>, %arg5: memref<1x1x1x128xf32, #tpu.memory_space<vmem>>, %arg6: memref<1x128xf32, #tpu.memory_space<vmem>>) attributes {dimension_semantics = [#tpu.dimension_semantics<parallel>, #tpu.dimension_semantics<parallel>, #tpu.dimension_semantics<arbitrary>], iteration_bounds = array<i64: 1, 2, 1>, scalar_prefetch = 0 : i64, scratch_operands = 1 : i64, tpu.core_type = #tpu.core_type<tc>, window_params = [{transform_indices = @transform_0, window_bounds = array<i64: 1, 8, 2048>}, {pipeline_mode = #tpu.pipeline_mode<synchronous>, transform_indices = @transform_1, window_bounds = array<i64: 2048, 128>}, {transform_indices = @transform_2, window_bounds = array<i64: 1, 1, 1, 128>}]} {
    %c0_i32 = arith.constant 0 : i32
    %0 = arith.cmpi eq, %arg2, %c0_i32 : i32
    %1 = arith.extui %0 : i1 to i32
    %c0_i32_0 = arith.constant 0 : i32
    %2 = arith.cmpi ne, %1, %c0_i32_0 : i32
    scf.if %2 {
      %cst_13 = arith.constant 0xFF800000 : f32
      %27 = vector.broadcast %cst_13 : f32 to vector<1x128xf32>
      %c0_14 = arith.constant 0 : index
      %c0_15 = arith.constant 0 : index
      %28 = vector.load %arg6[%c0_14, %c0_15] : memref<1x128xf32, #tpu.memory_space<vmem>>, vector<1x128xf32>
      tpu.vector_store %arg6[%c0_14, %c0_15], %27 {strides = array<i32>} : memref<1x128xf32, #tpu.memory_space<vmem>>, vector<1x128xf32>,
    } else {
    }
    %c0 = arith.constant 0 : index
    %c0_1 = arith.constant 0 : index
    %c0_2 = arith.constant 0 : index
    %3 = vector.load %arg3[%c0, %c0_1, %c0_2] : memref<1x8x2048xbf16, #tpu.memory_space<vmem>>, vector<1x8x2048xbf16>
    %4 = vector.shape_cast %3 : vector<1x8x2048xbf16> to vector<8x2048xbf16>
    %c0_3 = arith.constant 0 : index
    %c0_4 = arith.constant 0 : index
    %5 = vector.load %arg4[%c0_3, %c0_4] : memref<2048x128xbf16, #tpu.memory_space<vmem>>, vector<2048x128xbf16>
    %cst = arith.constant dense<0.000000e+00> : vector<8x128xf32>
    %6 = tpu.matmul %4, %5, %cst {dimension_numbers = #tpu.dot_dimension_numbers<[1], [0], [0], [1], [0, 0, 1, 1], [], []>} : vector<8x2048xbf16>, vector<2048x128xbf16>, vector<8x128xf32> -> vector<8x128xf32>
    %c1_i32 = arith.constant 1 : i32
    %7 = arith.muli %arg0, %c1_i32 : i32
    %8 = arith.addi %7, %arg2 : i32
    %c8_i32 = arith.constant 8 : i32
    %9 = arith.muli %8, %c8_i32 : i32
    %10 = tpu.iota {dimensions = array<i32: 0>} : vector<8x1xi32>
    %11 = vector.broadcast %9 : i32 to vector<8x1xi32>
    %12 = arith.addi %11, %10 : vector<8x1xi32>
    %c6_i32 = arith.constant 6 : i32
    %13 = vector.broadcast %c6_i32 : i32 to vector<8x1xi32>
    %14 = arith.cmpi slt, %12, %13 : vector<8x1xi32>
    %cst_5 = arith.constant 0xFF800000 : f32
    %15 = vector.shape_cast %14 : vector<8x1xi1> to vector<8x1xi1>
    %16 = vector.broadcast %15 : vector<8x1xi1> to vector<8x128xi1>
    %17 = vector.broadcast %cst_5 : f32 to vector<8x128xf32>
    %18 = arith.select %16, %6, %17 : vector<8x128xi1>, vector<8x128xf32>
    %c0_6 = arith.constant 0 : index
    %c0_7 = arith.constant 0 : index
    %19 = vector.load %arg6[%c0_6, %c0_7] : memref<1x128xf32, #tpu.memory_space<vmem>>, vector<1x128xf32>
    %cst_8 = arith.constant dense<0xFF800000> : vector<128xf32>
    %20 = vector.multi_reduction <maximumf>, %18, %cst_8 [0] : vector<8x128xf32> to vector<128xf32>
    %21 = vector.shape_cast %20 : vector<128xf32> to vector<1x128xf32>
    %22 = arith.maximumf %19, %21 : vector<1x128xf32>
    %c0_9 = arith.constant 0 : index
    %c0_10 = arith.constant 0 : index
    %23 = vector.load %arg6[%c0_9, %c0_10] : memref<1x128xf32, #tpu.memory_space<vmem>>, vector<1x128xf32>
    tpu.vector_store %arg6[%c0_9, %c0_10], %22 {strides = array<i32>} : memref<1x128xf32, #tpu.memory_space<vmem>>, vector<1x128xf32>,
    %c0_i32_11 = arith.constant 0 : i32
    %24 = arith.cmpi eq, %arg2, %c0_i32_11 : i32
    %25 = arith.extui %24 : i1 to i32
    %c0_i32_12 = arith.constant 0 : i32
    %26 = arith.cmpi ne, %25, %c0_i32_12 : i32
    scf.if %26 {
      %c0_13 = arith.constant 0 : index
      %c0_14 = arith.constant 0 : index
      %27 = vector.load %arg6[%c0_13, %c0_14] : memref<1x128xf32, #tpu.memory_space<vmem>>, vector<1x128xf32>
      %c0_15 = arith.constant 0 : index
      %c0_16 = arith.constant 0 : index
      %c0_17 = arith.constant 0 : index
      %c0_18 = arith.constant 0 : index
      %28 = vector.load %arg5[%c0_15, %c0_16, %c0_17, %c0_18] : memref<1x1x1x128xf32, #tpu.memory_space<vmem>>, vector<1x1x1x128xf32>
      %29 = vector.shape_cast %28 : vector<1x1x1x128xf32> to vector<1x128xf32>
      %30 = vector.shape_cast %27 : vector<1x128xf32> to vector<1x1x1x128xf32>
      tpu.vector_store %arg5[%c0_15, %c0_16, %c0_17, %c0_18], %30 {strides = array<i32>} : memref<1x1x1x128xf32, #tpu.memory_space<vmem>>, vector<1x1x1x128xf32>,
    } else {
    }
    return
  }
  func.func @transform_0(%arg0: i32, %arg1: i32, %arg2: i32) -> (i32, i32, i32) {
    %c1_i32 = arith.constant 1 : i32
    %0 = arith.muli %arg0, %c1_i32 : i32
    %1 = arith.addi %0, %arg2 : i32
    %c0_i32 = arith.constant 0 : i32
    %c0_i32_0 = arith.constant 0 : i32
    return %arg1, %1, %c0_i32 : i32, i32, i32
  }
  func.func @transform_1(%arg0: i32, %arg1: i32, %arg2: i32) -> (i32, i32) {
    %c0_i32 = arith.constant 0 : i32
    %c0_i32_0 = arith.constant 0 : i32
    %c0_i32_1 = arith.constant 0 : i32
    return %c0_i32, %c0_i32_0 : i32, i32
  }
  func.func @transform_2(%arg0: i32, %arg1: i32, %arg2: i32) -> (i32, i32, i32, i32) {
    %c0_i32 = arith.constant 0 : i32
    %c0_i32_0 = arith.constant 0 : i32
    %c0_i32_1 = arith.constant 0 : i32
    return %arg0, %arg1, %c0_i32, %c0_i32_0 : i32, i32, i32, i32
  }
}

module attributes {stable_mosaic.version = 11 : i64} {
  func.func @kernel(%arg0: i32, %arg1: i32, %arg2: i32, %arg3: memref<1x8x2048xbf16, #tpu.memory_space<vmem>>, %arg4: memref<2048x128xbf16, #tpu.memory_space<vmem>>, %arg5: memref<1x1x1x128xf32, #tpu.memory_space<vmem>>, %arg6: memref<1x128xf32, #tpu.memory_space<vmem>>) attributes {dimension_semantics = [#tpu.dimension_semantics<parallel>, #tpu.dimension_semantics<parallel>, #tpu.dimension_semantics<arbitrary>], iteration_bounds = array<i64: 1, 2, 1>, scalar_prefetch = 0 : i64, scratch_operands = 1 : i64, tpu.core_type = #tpu.core_type<tc>, window_params = [{transform_indices = @transform_0, window_bounds = array<i64: 1, 8, 2048>}, {pipeline_mode = #tpu.pipeline_mode<synchronous>, transform_indices = @transform_1, window_bounds = array<i64: 2048, 128>}, {transform_indices = @transform_2, window_bounds = array<i64: 1, 1, 1, 128>}]} {
    %c0_i32 = arith.constant 0 : i32
    %0 = arith.cmpi eq, %arg2, %c0_i32 : i32
    %1 = arith.extui %0 : i1 to i32
    %c0_i32_0 = arith.constant 0 : i32
    %2 = arith.cmpi ne, %1, %c0_i32_0 : i32
    scf.if %2 {
      %cst_13 = arith.constant 0xFF800000 : f32
      %27 = vector.broadcast %cst_13 : f32 to vector<1x128xf32>
      %c0_14 = arith.constant 0 : index
      %c0_15 = arith.constant 0 : index
      %28 = vector.load %arg6[%c0_14, %c0_15] : memref<1x128xf32, #tpu.memory_space<vmem>>, vector<1x128xf32>
      tpu.vector_store %arg6[%c0_14, %c0_15], %27 {strides = array<i32>} : memref<1x128xf32, #tpu.memory_space<vmem>>, vector<1x128xf32>,
    } else {
    }
    %c0 = arith.constant 0 : index
    %c0_1 = arith.constant 0 : index
    %c0_2 = arith.constant 0 : index
    %3 = vector.load %arg3[%c0, %c0_1, %c0_2] : memref<1x8x2048xbf16, #tpu.memory_space<vmem>>, vector<1x8x2048xbf16>
    %4 = vector.shape_cast %3 : vector<1x8x2048xbf16> to vector<8x2048xbf16>
    %c0_3 = arith.constant 0 : index
    %c0_4 = arith.constant 0 : index
    %5 = vector.load %arg4[%c0_3, %c0_4] : memref<2048x128xbf16, #tpu.memory_space<vmem>>, vector<2048x128xbf16>
    %cst = arith.constant dense<0.000000e+00> : vector<8x128xf32>
    %6 = tpu.matmul %4, %5, %cst {dimension_numbers = #tpu.dot_dimension_numbers<[1], [0], [0], [1], [0, 0, 1, 1], [], []>} : vector<8x2048xbf16>, vector<2048x128xbf16>, vector<8x128xf32> -> vector<8x128xf32>
    %c1_i32 = arith.constant 1 : i32
    %7 = arith.muli %arg0, %c1_i32 : i32
    %8 = arith.addi %7, %arg2 : i32
    %c8_i32 = arith.constant 8 : i32
    %9 = arith.muli %8, %c8_i32 : i32
    %10 = tpu.iota {dimensions = array<i32: 0>} : vector<8x1xi32>
    %11 = vector.broadcast %9 : i32 to vector<8x1xi32>
    %12 = arith.addi %11, %10 : vector<8x1xi32>
    %c6_i32 = arith.constant 6 : i32
    %13 = vector.broadcast %c6_i32 : i32 to vector<8x1xi32>
    %14 = arith.cmpi slt, %12, %13 : vector<8x1xi32>
    %cst_5 = arith.constant 0xFF800000 : f32
    %15 = vector.shape_cast %14 : vector<8x1xi1> to vector<8x1xi1>
    %16 = vector.broadcast %15 : vector<8x1xi1> to vector<8x128xi1>
    %17 = vector.broadcast %cst_5 : f32 to vector<8x128xf32>
    %18 = arith.select %16, %6, %17 : vector<8x128xi1>, vector<8x128xf32>
    %c0_6 = arith.constant 0 : index
    %c0_7 = arith.constant 0 : index
    %19 = vector.load %arg6[%c0_6, %c0_7] : memref<1x128xf32, #tpu.memory_space<vmem>>, vector<1x128xf32>
    %cst_8 = arith.constant dense<0xFF800000> : vector<128xf32>
    %20 = vector.multi_reduction <maximumf>, %18, %cst_8 [0] : vector<8x128xf32> to vector<128xf32>
    %21 = vector.shape_cast %20 : vector<128xf32> to vector<1x128xf32>
    %22 = arith.maximumf %19, %21 : vector<1x128xf32>
    %c0_9 = arith.constant 0 : index
    %c0_10 = arith.constant 0 : index
    %23 = vector.load %arg6[%c0_9, %c0_10] : memref<1x128xf32, #tpu.memory_space<vmem>>, vector<1x128xf32>
    tpu.vector_store %arg6[%c0_9, %c0_10], %22 {strides = array<i32>} : memref<1x128xf32, #tpu.memory_space<vmem>>, vector<1x128xf32>,
    %c0_i32_11 = arith.constant 0 : i32
    %24 = arith.cmpi eq, %arg2, %c0_i32_11 : i32
    %25 = arith.extui %24 : i1 to i32
    %c0_i32_12 = arith.constant 0 : i32
    %26 = arith.cmpi ne, %25, %c0_i32_12 : i32
    scf.if %26 {
      %c0_13 = arith.constant 0 : index
      %c0_14 = arith.constant 0 : index
      %27 = vector.load %arg6[%c0_13, %c0_14] : memref<1x128xf32, #tpu.memory_space<vmem>>, vector<1x128xf32>
      %c0_15 = arith.constant 0 : index
      %c0_16 = arith.constant 0 : index
      %c0_17 = arith.constant 0 : index
      %c0_18 = arith.constant 0 : index
      %28 = vector.load %arg5[%c0_15, %c0_16, %c0_17, %c0_18] : memref<1x1x1x128xf32, #tpu.memory_space<vmem>>, vector<1x1x1x128xf32>
      %29 = vector.shape_cast %28 : vector<1x1x1x128xf32> to vector<1x128xf32>
      %30 = vector.shape_cast %27 : vector<1x128xf32> to vector<1x1x1x128xf32>
      tpu.vector_store %arg5[%c0_15, %c0_16, %c0_17, %c0_18], %30 {strides = array<i32>} : memref<1x1x1x128xf32, #tpu.memory_space<vmem>>, vector<1x1x1x128xf32>,
    } else {
    }
    return
  }
  func.func @transform_0(%arg0: i32, %arg1: i32, %arg2: i32) -> (i32, i32, i32) {
    %c1_i32 = arith.constant 1 : i32
    %0 = arith.muli %arg0, %c1_i32 : i32
    %1 = arith.addi %0, %arg2 : i32
    %c0_i32 = arith.constant 0 : i32
    %c0_i32_0 = arith.constant 0 : i32
    return %arg1, %1, %c0_i32 : i32, i32, i32
  }
  func.func @transform_1(%arg0: i32, %arg1: i32, %arg2: i32) -> (i32, i32) {
    %c0_i32 = arith.constant 0 : i32
    %c0_i32_0 = arith.constant 0 : i32
    %c0_i32_1 = arith.constant 0 : i32
    return %c0_i32, %c0_i32_0 : i32, i32
  }
  func.func @transform_2(%arg0: i32, %arg1: i32, %arg2: i32) -> (i32, i32, i32, i32) {
    %c0_i32 = arith.constant 0 : i32
    %c0_i32_0 = arith.constant 0 : i32
    %c0_i32_1 = arith.constant 0 : i32
    return %arg0, %arg1, %c0_i32, %c0_i32_0 : i32, i32, i32, i32
  }
}

</mosaic_0001>

<bundles_post_ra>
// kernel: tpu_custom_call.1
= control target key start
LH: loop header
LB: loop body
LE: loop exit
PB: predicated region body
PF: predicated region fallthrough
CT: control target
= control target key end

     0   :  { %7 = vsyncpa [#allocation4], 0  ;;  %s2696_s0 = inlined_call_operand.hbm [shape: bf16[2,8,2048], index: 0, kind: input, shape index: {}]   ;;  %s2697_s1 = inlined_call_operand.hbm [shape: bf16[2048,128], index: 1, kind: input, shape index: {}]   ;;  %s2698_s2 = inlined_call_operand.hbm [shape: f32[1,2,1,128], index: 2, kind: output, shape index: {}]  }
   0x1   :  { %9 = vsyncpa [#allocation4 + $0x1], 0 }
   0x2   :  { %10 = vsyncpa [#allocation7], 0 }
   0x3   :  { %11 = vsyncpa [#allocation5], 0 }
   0x4   :  { %13 = vsyncpa [#allocation5 + $0x1], 0  ;;  %s2471_s9 = smov 0   ;;  %s2473_s10 = smov 0  }
   0x5   :  { %s2475_s11 = smov 0   ;;  %s2477_s12 = smov 0  }
   0x6   :  { %s2479_s13 = smov 0   ;;  %s2481_s14 = smov 0  }
   0x7 LB: > { %s1749_s15 = sadd.s32 4294967295, %s2448_s14   ;;  %s1750_s16 = sadd.s32 4294967294, %s2448_s14   ;;  %s2448_s14 = sphi %s2481_s14, %s19_s14   ;;  %s2444_s13 = sphi %s2479_s13, %s2722_s13   ;;  %s2440_s12 = sphi %s2477_s12, %s2721_s12   ;;  %s2436_s11 = sphi %s2475_s11, %s2720_s11   ;;  %s2432_s10 = sphi %s2473_s10, %s2719_s10   ;;  %s2428_s9 = sphi %s2471_s9, %s2718_s9  }
   0x8   : > { %p62_p0 = scmp.ne.s32.totalorder %s2432_s10, %s2428_s9  ;;  %p2505_p1 = scmp.eq.s32.totalorder %s1749_s15, 0 }
   0x9   : > { %p2509_p2 = scmp.eq.s32.totalorder %s1749_s15, 1  ;;  %p115_p3 = scmp.eq.s32.totalorder %s1750_s16, 1 }
   0xa   : > { %s2703_s17 = scalar_select %p2505_p1, 1, 0 }
   0xb   : > { %s2704_s18 = scalar_select %p2509_p2, 1, 0 }
   0xc   : > { %p2515_p4 = por %p2505_p1, %p62_p0  ;;  %p1751_p5 = scmp.ge.s32.totalorder %s2448_s14, 1 }
   0xd   : > { %p2520_p6 = por %p115_p3, %p62_p0  ;;  %p122_p7 = scmp.lt.s32.totalorder %s2448_s14, 3 }
   0xe   : > { %s2705_s19 = scalar_select %p2515_p4, 1, 0 }
   0xf   : > { %s2706_s20 = scalar_select %p2520_p6, 1, 0 }
  0x10   : > { %p2525_p8 = pnand %p1751_p5, %p122_p7  ;;  %s2450_s22 = smov [#allocation6]  }
  0x11   : > { %s134_s23 = sshll.u32 %s2450_s22, 4  ;;  %s34_s25 = sadd.s32 1, %s2444_s13  ;;  %s135_s23 = int_to_ptr.vmem [resolvable:$true] %s134_s23 }
  0x12   : > { %s2707_s21 = scalar_select %p2525_p8, 1, 0 }
  0x13   : > { %p2092_p9 = pneg %p2525_p8  ;;  %s2304_s28 = scalar_lea.hbm %s2697_s1, 16384 }
  0x14   : > { %p2305_p12 = scmp.ne.s32.totalorder %s2697_s1, %s2304_s28  ;;  %p2311_p5 = scmp.lt.u32.totalorder %s2304_s28, %s2697_s1 }
  0x15   : > { %p2534_p11 = pnand %p2092_p9, %p2505_p1 }
  0x17   : > { %p2306_p13 = pneg %p2534_p11 }
  0x19   : > { %p2307_p0 = pnand %p2306_p13, %p2305_p12 }
  0x1b   : > { %p2308_p3 = pneg %p2307_p0 }
  0x1d   : > { %p2313_p7 = pnand %p2311_p5, %p2308_p3 }
  0x1f   : > { %2316 = shalt.err (!%p2313_p7)
}
  0x20   : > { %s2317_s5 = scalar_lea.vmem %s135_s23, 16384  ;;  %p2325_p1 = scmp.lt.s32.totalorder %s135_s23, %s135_s23 }
  0x21   : > { %p2318_p9 = scmp.ne.s32.totalorder %s135_s23, %s2317_s5  ;;  %p2326_p4 = scmp.lt.s32.totalorder %s2317_s5, %s2317_s5 }
  0x23   : > { %p2320_p10 = pnand %p2318_p9, %p2306_p13  ;;  %p2327_p8 = por %p2326_p4, %p2325_p1 }
  0x25   : > { %p2321_p6 = pneg %p2320_p10 }
  0x27   : > { %p2328_p2 = pnand %p2327_p8, %p2321_p6 }
  0x29   : > { %2331 = shalt.err (!%p2328_p2)
}
  0x2a   : > { %s2451_s6 = smov 64   ;;  %s2452_s7 = smov 4  }
  0x2b   : > { %2095 = dma.hbm_to_vmem [thread:$0]  (!%p2534_p11), %s2697_s1, 16384, %s135_s23, [#allocation7], %s2451_s6, %s2451_s6, %s2452_s7  }
  0x2c   : > { %p36_p1 = scmp.ge.s32.totalorder %s34_s25, 2  ;;  %s49_s16 = sadd.s32 1, %s2436_s11 }
  0x2d   : > { %p56_p2 = scmp.ne.s32.totalorder %s2436_s11, %s2432_s10  ;;  %p57_p4 = scmp.eq.s32.totalorder %s2448_s14, 0 }
  0x2e   : > { %s2724_s25 = smov (%p36_p1, %s34_s25), 0  ;;  %p2710_p8 = scmp.ne.s32.totalorder %s2704_s18, 0 }
  0x2f   : > { %p2561_p6 = por %p57_p4, %p56_p2  ;;  %s44_s24 = ssub.s32 %s2444_s13, %s2724_s25 }
  0x30   : > { %p2567_p10 = por %p2710_p8, %p56_p2  ;;  %p2105_p12 = scmp.lt.s32.totalorder %s2448_s14, 2 }
  0x31   : > { %p47_p11 = scmp.eq.s32.totalorder %s44_s24, 0  ;;  %s148_s23 = sand.u32 1, %s2436_s11  }
  0x32   : > { %s1754_s27 = sshll.u32 %s148_s23, 6  ;;  %s1907_s29 = sshll.u32 %s2444_s13, 10 }
  0x33   : > { %s2576_s28 = scalar_select %p47_p11, %s2436_s11, %s49_s16  }
  0x34   : > { %s2582_s4 = scalar_lea.hbm %s2696_s0, %s1907_s29  ;;  %s152_s18 = scalar_lea.vmem [#allocation3], %s1754_s27 }
  0x35   : > { %s163_s5 = sshll.u32 %s152_s18, 4  ;;  %p2588_p13 = pnand %p2105_p12, %p2561_p6  ;;  %s2584_s5 = int_to_ptr.vmem [resolvable:$true] %s163_s5 }
  0x36   : > { %s149_s7 = scalar_lea.sflag [#allocation4], %s148_s23  ;;  %s2332_s8 = scalar_lea.hbm %s2582_s4, 1024 }
  0x37   : > { %p2333_p0 = scmp.ne.s32.totalorder %s2582_s4, %s2332_s8  ;;  %p2334_p3 = pneg %p2588_p13 }
  0x38   : > { %s2337_s24 = scalar_lea.hbm %s2696_s0, 2048  ;;  %p2338_p9 = scmp.lt.u32.totalorder %s2582_s4, %s2696_s0 }
  0x39   : > { %p2335_p5 = pnand %p2334_p3, %p2333_p0  ;;  %p2339_p1 = scmp.lt.u32.totalorder %s2337_s24, %s2332_s8 }
  0x3a   : > { %p2341_p4 = scmp.lt.u32.totalorder %s2332_s8, %s2582_s4 }
  0x3b   : > { %p2336_p7 = pneg %p2335_p5  ;;  %p2340_p2 = por %p2339_p1, %p2338_p9 }
  0x3d   : > { %p2342_p6 = por %p2341_p4, %p2340_p2 }
  0x3f   : > { %p2343_p8 = pnand %p2342_p6, %p2336_p7 }
  0x41   : > { %2346 = shalt.err (!%p2343_p8)
}
  0x42   : > { %s2347_s23 = scalar_lea.vmem %s2584_s5, 1024  ;;  %s2453_s29 = smov [#allocation3]  }
  0x43   : > { %p2348_p12 = scmp.ne.s32.totalorder %s2584_s5, %s2347_s23  ;;  %s2352_s30 = sshll.u32 %s2453_s29, 4  ;;  %s2353_s30 = int_to_ptr.vmem [resolvable:$false] %s2352_s30 }
  0x44   : > { %s2354_s3 = scalar_lea.vmem %s2353_s30, 2048  ;;  %p2355_p5 = scmp.lt.s32.totalorder %s2584_s5, %s2353_s30 }
  0x45   : > { %p2350_p11 = pnand %p2348_p12, %p2334_p3  ;;  %p2356_p9 = scmp.lt.s32.totalorder %s2354_s3, %s2347_s23 }
  0x47   : > { %p2351_p0 = pneg %p2350_p11  ;;  %p2357_p1 = por %p2356_p9, %p2355_p5 }
  0x49   : > { %p2358_p2 = pnand %p2357_p1, %p2351_p0 }
  0x4b   : > { %2361 = shalt.err (!%p2358_p2)
}
  0x4c   : > { %2099 = dma.hbm_to_vmem [thread:$0]  (!%p2588_p13), %s2582_s4, 1024, %s2584_s5, %s149_s7  }
  0x4d   : > { %p2713_p7 = scmp.ne.s32.totalorder %s2707_s21, 0 }
  0x4e   : > { %s2620_s18 = sand.u32 (!%p2713_p7), 1, %s2432_s10   ;;  %p2714_p3 = scmp.ne.s32.totalorder (!%p2713_p7), %s2705_s19, 0 }
  0x4f   : > { %172 = sbr.rel (%p2713_p7) target bundleno = 476 (0x1dc), region = 28  ;;  %s1758_s8 = sshll.u32 (!%p2713_p7), %s2620_s18, 6 }
  0x50   : > { %s175_s15 = scalar_lea.sflag (!%p2713_p7), [#allocation4], %s2620_s18  ;;  %s2624_s16 = scalar_lea.vmem (!%p2713_p7), [#allocation3], %s1758_s8 }
  0x56   : > { %2415 = dma.done.wait (%p2714_p3), %s175_s15, 1024  }
  0x57   : > { %2417 = vsyncadd (%p2714_p3), %s175_s15, 4294966272  ;;  %p2715_p13 = scmp.ne.s32.totalorder %s2703_s17, 0 }
  0x59   : > { %2419 = dma.done.wait (%p2715_p13), [#allocation7], 16384  }
  0x5a   : > { %2421 = vsyncadd (%p2715_p13), [#allocation7], 4294950912  ;;  %v2160_v0 = vld [vmem:[#allocation6 + $0x40] sm:$0xff]   ;;  %v2164_v4 = vld [vmem:[#allocation6 + $0x48] sm:$0xff]   ;;  %s1904_s17 = sshll.u32 %s2440_s12, 4  ;;  %s201_s19 = scalar_lea.vmem [#allocation8], %s2620_s18 }
  0x5b   : > { %v2161_v1 = vld [vmem:[#allocation6 + $0xc0] sm:$0xff]   ;;  %1908 = vmatprep.subr.bf16.mxu0 %v2160_v0  ;;  %v2165_v5 = vld [vmem:[#allocation6 + $0xc8] sm:$0xff]   ;;  %v2168_v8 = vld [vmem:[#allocation6 + $0x50] sm:$0xff]   ;;  %s1656_s21 = sshll.u32 %s201_s19, 4  ;;  %s2647_s6 = scalar_lea.hbm %s2698_s2, %s1904_s17  ;;  %s2649_s21 = int_to_ptr.vmem [resolvable:$true] %s1656_s21 }
  0x5c   : > { %v2162_v2 = vld [vmem:[#allocation6] sm:$0xff]   ;;  %1930 = vmatprep.subr.bf16.mxu1 %v2161_v1  ;;  %v2166_v6 = vld [vmem:[#allocation6 + $0x8] sm:$0xff]   ;;  %v2169_v9 = vld [vmem:[#allocation6 + $0xd0] sm:$0xff]   ;;  %s1642_s7 = scalar_lea.sflag [#allocation5], %s2620_s18  ;;  %s2362_s24 = scalar_lea.vmem %s2649_s21, 16 }
  0x5d   : > { %v2163_v3 = vld [vmem:[#allocation6 + $0x80] sm:$0xff]   ;;  %1909 = vmatpush3.bf16.msra.mxu0 %v2162_v2  ;;  %v2167_v7 = vld [vmem:[#allocation6 + $0x88] sm:$0xff]   ;;  %v2170_v10 = vld [vmem:[#allocation6 + $0x10] sm:$0xff]   ;;  %p2363_p4 = scmp.ne.s32.totalorder %s2649_s21, %s2362_s24  ;;  %s2455_s12 = smov [#allocation8]  }
  0x5e   : > { %1931 = vmatpush3.bf16.msra.mxu1 %v2163_v3  ;;  %1910 = vmatprep.subr.bf16.mxu0 %v2164_v4  ;;  %v2171_v11 = vld [vmem:[#allocation6 + $0x90] sm:$0xff]   ;;  %v2172_v12 = vld [vmem:[#allocation6 + $0x58] sm:$0xff]   ;;  %v2176_v16 = vld [vmem:[#allocation6 + $0x60] sm:$0xff]   ;;  %s2366_s22 = sshll.u32 %s2455_s12, 4  ;;  %s2367_s22 = int_to_ptr.vmem [resolvable:$false] %s2366_s22 }
  0x5f   : > { %1932 = vmatprep.subr.bf16.mxu1 %v2165_v5  ;;  %v2173_v13 = vld [vmem:[#allocation6 + $0xd8] sm:$0xff]   ;;  %v2177_v17 = vld [vmem:[#allocation6 + $0xe0] sm:$0xff]   ;;  %v2180_v20 = vld [vmem:[#allocation6 + $0x68] sm:$0xff]   ;;  %p2364_p6 = pnand %p2363_p4, %p2567_p10  ;;  %s2368_s27 = scalar_lea.vmem %s2367_s22, 32 }
  0x60   : > { %v2174_v14 = vld [vmem:[#allocation6 + $0x18] sm:$0xff]   ;;  %v2178_v18 = vld [vmem:[#allocation6 + $0x20] sm:$0xff]   ;;  %v2181_v21 = vld [vmem:[#allocation6 + $0xe8] sm:$0xff]   ;;  %p2369_p12 = scmp.lt.s32.totalorder %s2649_s21, %s2367_s22  ;;  %p2370_p11 = scmp.lt.s32.totalorder %s2368_s27, %s2362_s24 }
  0x61   : > { %1911 = vmatpush3.bf16.msra.mxu0 %v2166_v6  ;;  %v2175_v15 = vld [vmem:[#allocation6 + $0x98] sm:$0xff]   ;;  %v2179_v19 = vld [vmem:[#allocation6 + $0xa0] sm:$0xff]   ;;  %v2182_v22 = vld [vmem:[#allocation6 + $0x28] sm:$0xff]   ;;  %p2365_p8 = pneg %p2364_p6 }
  0x62   : > { %1933 = vmatpush3.bf16.msra.mxu1 %v2167_v7  ;;  %1912 = vmatprep.subr.bf16.mxu0 %v2168_v8  ;;  %v2183_v23 = vld [vmem:[#allocation6 + $0xa8] sm:$0xff]   ;;  %v2184_v24 = vld [vmem:[#allocation6 + $0x70] sm:$0xff]   ;;  %v2188_v28 = vld [vmem:[#allocation6 + $0x78] sm:$0xff]   ;;  %p2371_p0 = por %p2370_p11, %p2369_p12 }
  0x63   : > { %1934 = vmatprep.subr.bf16.mxu1 %v2169_v9  ;;  %v2185_v25 = vld [vmem:[#allocation6 + $0xf0] sm:$0xff]   ;;  %v2189_v29 = vld [vmem:[#allocation6 + $0xf8] sm:$0xff]   ;;  %v209_v32 = vld [vmem:[%s2624_s16] sm:$0xff] }
  0x64   : > { %v2186_v26 = vld [vmem:[#allocation6 + $0x30] sm:$0xff]   ;;  %v2190_v30 = vld [vmem:[#allocation6 + $0x38] sm:$0xff]   ;;  %v210_v33 = vld [vmem:[%s2624_s16 + $0x8] sm:$0xff]  ;;  %v1760_v34 = vcombine.low %v209_v32, %v209_v32  ;;  %v1761_v35 = vcombine.high %v209_v32, %v209_v32  ;;  %p2372_p5 = pnand %p2371_p0, %p2365_p8 }
  0x65   : > { %1913 = vmatpush3.bf16.msra.mxu0 %v2170_v10  ;;  %v2187_v27 = vld [vmem:[#allocation6 + $0xb0] sm:$0xff]   ;;  %v2191_v31 = vld [vmem:[#allocation6 + $0xb8] sm:$0xff]   ;;  %v1762_v36 = vcombine.low %v210_v33, %v210_v33  ;;  %v1763_v37 = vcombine.high %v210_v33, %v210_v33  ;;  %v2196_v38 = vld [vmem:[#allocation6 + $0x140] sm:$0xff]  }
  0x66   : > { %1935 = vmatpush3.bf16.msra.mxu1 %v2171_v11  ;;  %1914 = vmatprep.subr.bf16.mxu0 %v2172_v12  ;;  %v2197_v39 = vld [vmem:[#allocation6 + $0x1c0] sm:$0xff]   ;;  %v2200_v42 = vld [vmem:[#allocation6 + $0x148] sm:$0xff]   ;;  %v2204_v46 = vld [vmem:[#allocation6 + $0x150] sm:$0xff]  }
  0x67   : > { %1936 = vmatprep.subr.bf16.mxu1 %v2173_v13  ;;  %1329 = vmatprep.mubr.bf16.mxu0 %v1761_v35  ;;  %v2198_v40 = vld [vmem:[#allocation6 + $0x100] sm:$0xff]   ;;  %v2201_v43 = vld [vmem:[#allocation6 + $0x1c8] sm:$0xff]   ;;  %v2205_v47 = vld [vmem:[#allocation6 + $0x1d0] sm:$0xff]  }
  0x68   : > { %1369 = vmatprep.mubr.bf16.mxu1 %v1763_v37  ;;  %v2199_v41 = vld [vmem:[#allocation6 + $0x180] sm:$0xff]   ;;  %v2202_v44 = vld [vmem:[#allocation6 + $0x108] sm:$0xff]   ;;  %v2206_v48 = vld [vmem:[#allocation6 + $0x110] sm:$0xff]  }
  0x69   : > { %1915 = vmatpush3.bf16.msra.mxu0 %v2174_v14  ;;  %v2203_v45 = vld [vmem:[#allocation6 + $0x188] sm:$0xff]   ;;  %v2207_v49 = vld [vmem:[#allocation6 + $0x190] sm:$0xff]   ;;  %v2208_v50 = vld [vmem:[#allocation6 + $0x158] sm:$0xff]  }
  0x6a   : > { %1937 = vmatpush3.bf16.msra.mxu1 %v2175_v15  ;;  %1916 = vmatprep.subr.bf16.mxu0 %v2176_v16  ;;  %v2209_v51 = vld [vmem:[#allocation6 + $0x1d8] sm:$0xff]   ;;  %v2212_v54 = vld [vmem:[#allocation6 + $0x160] sm:$0xff]   ;;  %v2216_v58 = vld [vmem:[#allocation6 + $0x168] sm:$0xff]  }
  0x6b   : > { %1938 = vmatprep.subr.bf16.mxu1 %v2177_v17  ;;  %v2210_v52 = vld [vmem:[#allocation6 + $0x118] sm:$0xff]   ;;  %v2213_v55 = vld [vmem:[#allocation6 + $0x1e0] sm:$0xff]   ;;  %v2217_v59 = vld [vmem:[#allocation6 + $0x1e8] sm:$0xff]  }
  0x6c   : > { %v2211_v53 = vld [vmem:[#allocation6 + $0x198] sm:$0xff]   ;;  %v2214_v56 = vld [vmem:[#allocation6 + $0x120] sm:$0xff]   ;;  %v2218_v60 = vld [vmem:[#allocation6 + $0x128] sm:$0xff]  }
  0x6d   : > { %1917 = vmatpush3.bf16.msra.mxu0 %v2178_v18  ;;  %v2215_v57 = vld [vmem:[#allocation6 + $0x1a0] sm:$0xff]   ;;  %v2219_v61 = vld [vmem:[#allocation6 + $0x1a8] sm:$0xff]   ;;  %v2220_v62 = vld [vmem:[#allocation6 + $0x170] sm:$0xff]  }
  0x6e   : > { %1939 = vmatpush3.bf16.msra.mxu1 %v2179_v19  ;;  %1918 = vmatprep.subr.bf16.mxu0 %v2180_v20  ;;  %v2221_v63 = vld [vmem:[#allocation6 + $0x1f0] sm:$0xff]   ;;  %v2224_v2 = vld [vmem:[#allocation6 + $0x178] sm:$0xff]   ;;  %v2232_v12 = vld [vmem:[#allocation6 + $0x240] sm:$0xff]  }
  0x6f   : > { %1940 = vmatprep.subr.bf16.mxu1 %v2181_v21  ;;  %v2222_v0 = vld [vmem:[#allocation6 + $0x130] sm:$0xff]   ;;  %v2225_v3 = vld [vmem:[#allocation6 + $0x1f8] sm:$0xff]   ;;  %v2233_v13 = vld [vmem:[#allocation6 + $0x2c0] sm:$0xff]  }
  0x70   : > { %v2223_v1 = vld [vmem:[#allocation6 + $0x1b0] sm:$0xff]   ;;  %v2226_v4 = vld [vmem:[#allocation6 + $0x138] sm:$0xff]   ;;  %v2234_v14 = vld [vmem:[#allocation6 + $0x200] sm:$0xff]  }
  0x71   : > { %1919 = vmatpush3.bf16.msra.mxu0 %v2182_v22  ;;  %v2227_v5 = vld [vmem:[#allocation6 + $0x1b8] sm:$0xff]   ;;  %v211_v6 = vld [vmem:[%s2624_s16 + $0x10] sm:$0xff]  ;;  %v2235_v15 = vld [vmem:[#allocation6 + $0x280] sm:$0xff]  }
  0x72   : > { %1941 = vmatpush3.bf16.msra.mxu1 %v2183_v23  ;;  %1920 = vmatprep.subr.bf16.mxu0 %v2184_v24  ;;  %v1764_v7 = vcombine.low %v211_v6, %v211_v6  ;;  %v1765_v8 = vcombine.high %v211_v6, %v211_v6  ;;  %v212_v9 = vld [vmem:[%s2624_s16 + $0x18] sm:$0xff]  ;;  %v2236_v16 = vld [vmem:[#allocation6 + $0x248] sm:$0xff]   ;;  %v2240_v20 = vld [vmem:[#allocation6 + $0x250] sm:$0xff]  }
  0x73   : > { %1942 = vmatprep.subr.bf16.mxu1 %v2185_v25  ;;  %v1766_v10 = vcombine.low %v212_v9, %v212_v9  ;;  %v1767_v11 = vcombine.high %v212_v9, %v212_v9  ;;  %v2237_v17 = vld [vmem:[#allocation6 + $0x2c8] sm:$0xff]   ;;  %v2241_v21 = vld [vmem:[#allocation6 + $0x2d0] sm:$0xff]   ;;  %v2244_v24 = vld [vmem:[#allocation6 + $0x258] sm:$0xff]  }
  0x74   : > { %v2238_v18 = vld [vmem:[#allocation6 + $0x208] sm:$0xff]   ;;  %v2242_v22 = vld [vmem:[#allocation6 + $0x210] sm:$0xff]   ;;  %v2245_v25 = vld [vmem:[#allocation6 + $0x2d8] sm:$0xff]  }
  0x75   : > { %1921 = vmatpush3.bf16.msra.mxu0 %v2186_v26  ;;  %v2239_v19 = vld [vmem:[#allocation6 + $0x288] sm:$0xff]   ;;  %v2243_v23 = vld [vmem:[#allocation6 + $0x290] sm:$0xff]   ;;  %v2246_v26 = vld [vmem:[#allocation6 + $0x218] sm:$0xff]  }
  0x76   : > { %1943 = vmatpush3.bf16.msra.mxu1 %v2187_v27  ;;  %1922 = vmatprep.subr.bf16.mxu0 %v2188_v28  ;;  %v2247_v27 = vld [vmem:[#allocation6 + $0x298] sm:$0xff]   ;;  %v2248_v28 = vld [vmem:[#allocation6 + $0x260] sm:$0xff]   ;;  %v2252_v32 = vld [vmem:[#allocation6 + $0x268] sm:$0xff]  }
  0x77   : > { %1944 = vmatprep.subr.bf16.mxu1 %v2189_v29  ;;  %v2249_v29 = vld [vmem:[#allocation6 + $0x2e0] sm:$0xff]   ;;  %v2253_v33 = vld [vmem:[#allocation6 + $0x2e8] sm:$0xff]   ;;  %v2257_v37 = vld [vmem:[#allocation6 + $0x2f0] sm:$0xff]  }
  0x78   : > { %v2255_v35 = vld [vmem:[#allocation6 + $0x2a8] sm:$0xff]  }
  0x79   : > { %1923 = vmatpush3.bf16.msra.mxu0 %v2190_v30  ;;  %v2250_v30 = vld [vmem:[#allocation6 + $0x220] sm:$0xff]   ;;  %v2288_v6 = vld [vmem:[#allocation6 + $0x368] sm:$0xff]  }
  0x7a   : > { %1945 = vmatpush3.bf16.msra.mxu1 %v2191_v31  ;;  %1952 = vmatprep.subr.bf16.mxu0 %v2196_v38  ;;  %v2251_v31 = vld [vmem:[#allocation6 + $0x2a0] sm:$0xff]   ;;  %v2258_v38 = vld [vmem:[#allocation6 + $0x230] sm:$0xff]   ;;  %v2291_v9 = vld [vmem:[#allocation6 + $0x3a8] sm:$0xff]  }
  0x7b   : > { %1974 = vmatprep.subr.bf16.mxu1 %v2197_v39  ;;  %v2259_v39 = vld [vmem:[#allocation6 + $0x2b0] sm:$0xff]  }
  0x7c   : > { %1330 = vmatmul.mubr.bf16.vlgmr.msra.gmra.mrb[0].mxu0 %v1760_v34  ;;  %v2254_v34 = vld [vmem:[#allocation6 + $0x228] sm:$0xff]  }
  0x7d   : > { %1370 = vmatmul.mubr.bf16.vlgmr.msra.gmra.mrb[0].mxu1 %v1762_v36  ;;  %1953 = vmatpush3.bf16.msra.mxu0 %v2198_v40  ;;  %v2256_v36 = vld [vmem:[#allocation6 + $0x270] sm:$0xff]   ;;  %v2260_v40 = vld [vmem:[#allocation6 + $0x278] sm:$0xff]  }
  0x7e   : > { %1975 = vmatpush3.bf16.msra.mxu1 %v2199_v41  ;;  %1954 = vmatprep.subr.bf16.mxu0 %v2200_v42  ;;  %v2261_v41 = vld [vmem:[#allocation6 + $0x2f8] sm:$0xff]  }
  0x7f   : > { %1976 = vmatprep.subr.bf16.mxu1 %v2201_v43  ;;  %1409 = vmatprep.mubr.bf16.mxu0 %v1765_v8  ;;  %v2262_v42 = vld [vmem:[#allocation6 + $0x238] sm:$0xff]   ;;  %v2290_v8 = vld [vmem:[#allocation6 + $0x328] sm:$0xff]  }
  0x80   : > { %1449 = vmatprep.mubr.bf16.mxu1 %v1767_v11  ;;  %v2263_v43 = vld [vmem:[#allocation6 + $0x2b8] sm:$0xff]   ;;  %v2293_v11 = vld [vmem:[#allocation6 + $0x3f0] sm:$0xff]  }
  0x81   : > { %1955 = vmatpush3.bf16.msra.mxu0 %v2202_v44  ;;  %v213_v44 = vld [vmem:[%s2624_s16 + $0x20] sm:$0xff] }
  0x82   : > { %1977 = vmatpush3.bf16.msra.mxu1 %v2203_v45  ;;  %1956 = vmatprep.subr.bf16.mxu0 %v2204_v46  ;;  %v214_v45 = vld [vmem:[%s2624_s16 + $0x28] sm:$0xff]  ;;  %v1768_v46 = vcombine.low %v213_v44, %v213_v44 }
  0x83   : > { %1978 = vmatprep.subr.bf16.mxu1 %v2205_v47  ;;  %v1769_v47 = vcombine.high %v213_v44, %v213_v44 }
  0x85   : > { %1957 = vmatpush3.bf16.msra.mxu0 %v2206_v48  ;;  %v1770_v48 = vcombine.low %v214_v45, %v214_v45 }
  0x86   : > { %1979 = vmatpush3.bf16.msra.mxu1 %v2207_v49  ;;  %1958 = vmatprep.subr.bf16.mxu0 %v2208_v50  ;;  %v1771_v49 = vcombine.high %v214_v45, %v214_v45  ;;  %v2268_v50 = vld [vmem:[#allocation6 + $0x340] sm:$0xff]  }
  0x87   : > { %1980 = vmatprep.subr.bf16.mxu1 %v2209_v51  ;;  %v2269_v51 = vld [vmem:[#allocation6 + $0x3c0] sm:$0xff]  }
  0x89   : > { %1959 = vmatpush3.bf16.msra.mxu0 %v2210_v52  ;;  %v2270_v52 = vld [vmem:[#allocation6 + $0x300] sm:$0xff]  }
  0x8a   : > { %1981 = vmatpush3.bf16.msra.mxu1 %v2211_v53  ;;  %1960 = vmatprep.subr.bf16.mxu0 %v2212_v54  ;;  %v2271_v53 = vld [vmem:[#allocation6 + $0x380] sm:$0xff]   ;;  %v2272_v54 = vld [vmem:[#allocation6 + $0x348] sm:$0xff]  }
  0x8b   : > { %1982 = vmatprep.subr.bf16.mxu1 %v2213_v55  ;;  %v2273_v55 = vld [vmem:[#allocation6 + $0x3c8] sm:$0xff]  }
  0x8d   : > { %1961 = vmatpush3.bf16.msra.mxu0 %v2214_v56  ;;  %v2274_v56 = vld [vmem:[#allocation6 + $0x308] sm:$0xff]  }
  0x8e   : > { %1983 = vmatpush3.bf16.msra.mxu1 %v2215_v57  ;;  %1962 = vmatprep.subr.bf16.mxu0 %v2216_v58  ;;  %v2275_v57 = vld [vmem:[#allocation6 + $0x388] sm:$0xff]   ;;  %v2276_v58 = vld [vmem:[#allocation6 + $0x350] sm:$0xff]  }
  0x8f   : > { %1984 = vmatprep.subr.bf16.mxu1 %v2217_v59  ;;  %v2277_v59 = vld [vmem:[#allocation6 + $0x3d0] sm:$0xff]  }
  0x91   : > { %1963 = vmatpush3.bf16.msra.mxu0 %v2218_v60  ;;  %v2278_v60 = vld [vmem:[#allocation6 + $0x310] sm:$0xff]  }
  0x92   : > { %1985 = vmatpush3.bf16.msra.mxu1 %v2219_v61  ;;  %1964 = vmatprep.subr.bf16.mxu0 %v2220_v62  ;;  %v2279_v61 = vld [vmem:[#allocation6 + $0x390] sm:$0xff]   ;;  %v2280_v62 = vld [vmem:[#allocation6 + $0x358] sm:$0xff]  }
  0x93   : > { %1986 = vmatprep.subr.bf16.mxu1 %v2221_v63  ;;  %v2281_v63 = vld [vmem:[#allocation6 + $0x3d8] sm:$0xff]  }
  0x95   : > { %1965 = vmatpush3.bf16.msra.mxu0 %v2222_v0  ;;  %v2282_v0 = vld [vmem:[#allocation6 + $0x318] sm:$0xff]  }
  0x96   : > { %1987 = vmatpush3.bf16.msra.mxu1 %v2223_v1  ;;  %1966 = vmatprep.subr.bf16.mxu0 %v2224_v2  ;;  %v2283_v1 = vld [vmem:[#allocation6 + $0x398] sm:$0xff]   ;;  %v2284_v2 = vld [vmem:[#allocation6 + $0x360] sm:$0xff]  }
  0x97   : > { %1988 = vmatprep.subr.bf16.mxu1 %v2225_v3  ;;  %v2285_v3 = vld [vmem:[#allocation6 + $0x3e0] sm:$0xff]  }
  0x99   : > { %1967 = vmatpush3.bf16.msra.mxu0 %v2226_v4  ;;  %v2286_v4 = vld [vmem:[#allocation6 + $0x320] sm:$0xff]  }
  0x9a   : > { %1989 = vmatpush3.bf16.msra.mxu1 %v2227_v5  ;;  %1996 = vmatprep.subr.bf16.mxu0 %v2232_v12  ;;  %v2287_v5 = vld [vmem:[#allocation6 + $0x3a0] sm:$0xff]   ;;  %v2294_v12 = vld [vmem:[#allocation6 + $0x330] sm:$0xff]  }
  0x9b   : > { %2018 = vmatprep.subr.bf16.mxu1 %v2233_v13  ;;  %v2295_v13 = vld [vmem:[#allocation6 + $0x3b0] sm:$0xff]  }
  0x9c   : > { %1410 = vmatmul.mubr.bf16.vlgmr.msra.gmra.mrb[4].mxu0 %v1764_v7  ;;  %v2289_v7 = vld [vmem:[#allocation6 + $0x3e8] sm:$0xff]  }
  0x9d   : > { %1450 = vmatmul.mubr.bf16.vlgmr.msra.gmra.mrb[4].mxu1 %v1766_v10  ;;  %1997 = vmatpush3.bf16.msra.mxu0 %v2234_v14  ;;  %v2292_v10 = vld [vmem:[#allocation6 + $0x370] sm:$0xff]   ;;  %v2296_v14 = vld [vmem:[#allocation6 + $0x378] sm:$0xff]  }
  0x9e   : > { %2019 = vmatpush3.bf16.msra.mxu1 %v2235_v15  ;;  %1998 = vmatprep.subr.bf16.mxu0 %v2236_v16  ;;  %v2297_v15 = vld [vmem:[#allocation6 + $0x3f8] sm:$0xff]  }
  0x9f   : > { %2020 = vmatprep.subr.bf16.mxu1 %v2237_v17  ;;  %1489 = vmatprep.mubr.bf16.mxu0 %v1769_v47  ;;  %v2298_v16 = vld [vmem:[#allocation6 + $0x338] sm:$0xff]  }
  0xa0   : > { %1529 = vmatprep.mubr.bf16.mxu1 %v1771_v49  ;;  %v2299_v17 = vld [vmem:[#allocation6 + $0x3b8] sm:$0xff]  }
  0xa1   : > { %1999 = vmatpush3.bf16.msra.mxu0 %v2238_v18  ;;  %v215_v18 = vld [vmem:[%s2624_s16 + $0x30] sm:$0xff] }
  0xa2   : > { %2021 = vmatpush3.bf16.msra.mxu1 %v2239_v19  ;;  %2000 = vmatprep.subr.bf16.mxu0 %v2240_v20  ;;  %v216_v19 = vld [vmem:[%s2624_s16 + $0x38] sm:$0xff]  ;;  %v1772_v20 = vcombine.low %v215_v18, %v215_v18 }
  0xa3   : > { %2022 = vmatprep.subr.bf16.mxu1 %v2241_v21  ;;  %v1773_v21 = vcombine.high %v215_v18, %v215_v18 }
  0xa5   : > { %2001 = vmatpush3.bf16.msra.mxu0 %v2242_v22  ;;  %v1774_v22 = vcombine.low %v216_v19, %v216_v19 }
  0xa6   : > { %2023 = vmatpush3.bf16.msra.mxu1 %v2243_v23  ;;  %2002 = vmatprep.subr.bf16.mxu0 %v2244_v24  ;;  %v1775_v23 = vcombine.high %v216_v19, %v216_v19  ;;  %v2454_v24 = vmov -inf  }
  0xa7   : > { %2024 = vmatprep.subr.bf16.mxu1 %v2245_v25  ;;  %208 = vst [vmem:[#allocation2] sm:$0x1] %v2454_v24 }
  0xa9   : > { %2003 = vmatpush3.bf16.msra.mxu0 %v2246_v26 }
  0xaa   : > { %2025 = vmatpush3.bf16.msra.mxu1 %v2247_v27  ;;  %2004 = vmatprep.subr.bf16.mxu0 %v2248_v28 }
  0xab   : > { %2026 = vmatprep.subr.bf16.mxu1 %v2249_v29 }
  0xad   : > { %2005 = vmatpush3.bf16.msra.mxu0 %v2250_v30 }
  0xae   : > { %2027 = vmatpush3.bf16.msra.mxu1 %v2251_v31  ;;  %2006 = vmatprep.subr.bf16.mxu0 %v2252_v32 }
  0xaf   : > { %2028 = vmatprep.subr.bf16.mxu1 %v2253_v33 }
  0xb1   : > { %2007 = vmatpush3.bf16.msra.mxu0 %v2254_v34 }
  0xb2   : > { %2029 = vmatpush3.bf16.msra.mxu1 %v2255_v35  ;;  %2008 = vmatprep.subr.bf16.mxu0 %v2256_v36 }
  0xb3   : > { %2030 = vmatprep.subr.bf16.mxu1 %v2257_v37 }
  0xb5   : > { %2009 = vmatpush3.bf16.msra.mxu0 %v2258_v38 }
  0xb6   : > { %2031 = vmatpush3.bf16.msra.mxu1 %v2259_v39  ;;  %2010 = vmatprep.subr.bf16.mxu0 %v2260_v40 }
  0xb7   : > { %2032 = vmatprep.subr.bf16.mxu1 %v2261_v41 }
  0xb9   : > { %2011 = vmatpush3.bf16.msra.mxu0 %v2262_v42 }
  0xba   : > { %2033 = vmatpush3.bf16.msra.mxu1 %v2263_v43  ;;  %2040 = vmatprep.subr.bf16.mxu0 %v2268_v50 }
  0xbb   : > { %2062 = vmatprep.subr.bf16.mxu1 %v2269_v51 }
  0xbc   : > { %1490 = vmatmul.mubr.bf16.vlgmr.msra.gmra.mrb[8].mxu0 %v1768_v46 }
  0xbd   : > { %1530 = vmatmul.mubr.bf16.vlgmr.msra.gmra.mrb[8].mxu1 %v1770_v48  ;;  %2041 = vmatpush3.bf16.msra.mxu0 %v2270_v52 }
  0xbe   : > { %2063 = vmatpush3.bf16.msra.mxu1 %v2271_v53  ;;  %2042 = vmatprep.subr.bf16.mxu0 %v2272_v54 }
  0xbf   : > { %2064 = vmatprep.subr.bf16.mxu1 %v2273_v55  ;;  %1569 = vmatprep.mubr.bf16.mxu0 %v1773_v21 }
  0xc0   : > { %1609 = vmatprep.mubr.bf16.mxu1 %v1775_v23 }
  0xc1   : > { %2043 = vmatpush3.bf16.msra.mxu0 %v2274_v56 }
  0xc2   : > { %2065 = vmatpush3.bf16.msra.mxu1 %v2275_v57  ;;  %2044 = vmatprep.subr.bf16.mxu0 %v2276_v58 }
  0xc3   : > { %2066 = vmatprep.subr.bf16.mxu1 %v2277_v59 }
  0xc5   : > { %2045 = vmatpush3.bf16.msra.mxu0 %v2278_v60  ;;  %v1619_v60 = vlaneseq }
  0xc6   : > { %2067 = vmatpush3.bf16.msra.mxu1 %v2279_v61  ;;  %2046 = vmatprep.subr.bf16.mxu0 %v2280_v62 }
  0xc7   : > { %2068 = vmatprep.subr.bf16.mxu1 %v2281_v63 }
  0xc9   : > { %2047 = vmatpush3.bf16.msra.mxu0 %v2282_v0  ;;  %v1620_v0 = vshrl.u32 %v1619_v60, 7 }
  0xca   : > { %2069 = vmatpush3.bf16.msra.mxu1 %v2283_v1  ;;  %2048 = vmatprep.subr.bf16.mxu0 %v2284_v2 }
  0xcb   : > { %2070 = vmatprep.subr.bf16.mxu1 %v2285_v3  ;;  %vm1623_vm0 = vcmp.lt.s32.totalorder %v1620_v0, 6 }
  0xcd   : > { %2049 = vmatpush3.bf16.msra.mxu0 %v2286_v4 }
  0xce   : > { %2071 = vmatpush3.bf16.msra.mxu1 %v2287_v5  ;;  %2050 = vmatprep.subr.bf16.mxu0 %v2288_v6 }
  0xcf   : > { %2072 = vmatprep.subr.bf16.mxu1 %v2289_v7 }
  0xd1   : > { %2051 = vmatpush3.bf16.msra.mxu0 %v2290_v8 }
  0xd2   : > { %2073 = vmatpush3.bf16.msra.mxu1 %v2291_v9  ;;  %2052 = vmatprep.subr.bf16.mxu0 %v2292_v10 }
  0xd3   : > { %2074 = vmatprep.subr.bf16.mxu1 %v2293_v11 }
  0xd5   : > { %2053 = vmatpush3.bf16.msra.mxu0 %v2294_v12 }
  0xd6   : > { %2075 = vmatpush3.bf16.msra.mxu1 %v2295_v13  ;;  %2054 = vmatprep.subr.bf16.mxu0 %v2296_v14 }
  0xd7   : > { %2076 = vmatprep.subr.bf16.mxu1 %v2297_v15 }
  0xd9   : > { %2055 = vmatpush3.bf16.msra.mxu0 %v2298_v16  ;;  %v1627_v16 = vld [vmem:[#allocation2] sm:$0x1] }
  0xda   : > { %2077 = vmatpush3.bf16.msra.mxu1 %v2299_v17 }
  0xdc   : > { %1570 = vmatmul.mubr.bf16.vlgmr.msra.gmra.mrb[12].mxu0 %v1772_v20 }
  0xdd   : > { %1610 = vmatmul.mubr.bf16.vlgmr.msra.gmra.mrb[12].mxu1 %v1774_v22 }
 0x14f   : > { %v1924_v25 = vpop.f32.mrb[0].mxu0 }
 0x150   : > { %v1946_v26 = vpop.f32.mrb[0].mxu1  ;;  %v1925_v27 = vpop.f32.mrb[1].mxu0 }
 0x151   : > { %v1947_v28 = vpop.f32.mrb[1].mxu1  ;;  %v1926_v29 = vadd.f32 %v1925_v27, %v1924_v25  ;;  %v1927_v31 = vpop.f32.mrb[2].mxu0 }
 0x152   : > { %v1948_v30 = vadd.f32 %v1947_v28, %v1946_v26  ;;  %v1949_v32 = vpop.f32.mrb[2].mxu1  ;;  %v1928_v33 = vpop.f32.mrb[3].mxu0 }
 0x153   : > { %v1950_v34 = vpop.f32.mrb[3].mxu1 }
 0x154   : > { %v1372_v35 = vadd.f32 %v1948_v30, %v1926_v29 }
 0x16f   : > { %v1968_v36 = vpop.f32.mrb[4].mxu0 }
 0x170   : > { %v1990_v37 = vpop.f32.mrb[4].mxu1  ;;  %v1969_v38 = vpop.f32.mrb[5].mxu0 }
 0x171   : > { %v1991_v39 = vpop.f32.mrb[5].mxu1  ;;  %v1970_v40 = vadd.f32 %v1969_v38, %v1968_v36  ;;  %v1971_v42 = vpop.f32.mrb[6].mxu0 }
 0x172   : > { %v1992_v41 = vadd.f32 %v1991_v39, %v1990_v37  ;;  %v1993_v43 = vpop.f32.mrb[6].mxu1  ;;  %v1972_v44 = vpop.f32.mrb[7].mxu0 }
 0x173   : > { %v1994_v45 = vpop.f32.mrb[7].mxu1  ;;  %v1412_v46 = vadd.f32 %v1970_v40, %v1372_v35 }
 0x175   : > { %v1452_v47 = vadd.f32 %v1992_v41, %v1412_v46 }
 0x18f   : > { %v2012_v48 = vpop.f32.mrb[8].mxu0 }
 0x190   : > { %v2034_v49 = vpop.f32.mrb[8].mxu1  ;;  %v2013_v50 = vpop.f32.mrb[9].mxu0 }
 0x191   : > { %v2014_v51 = vadd.f32 %v2013_v50, %v2012_v48  ;;  %v2035_v52 = vpop.f32.mrb[9].mxu1  ;;  %v2015_v53 = vpop.f32.mrb[10].mxu0 }
 0x192   : > { %v2036_v54 = vadd.f32 %v2035_v52, %v2034_v49  ;;  %v2037_v55 = vpop.f32.mrb[10].mxu1  ;;  %v2016_v56 = vpop.f32.mrb[11].mxu0 }
 0x193   : > { %v1492_v57 = vadd.f32 %v2014_v51, %v1452_v47  ;;  %v2038_v58 = vpop.f32.mrb[11].mxu1 }
 0x195   : > { %v1532_v59 = vadd.f32 %v2036_v54, %v1492_v57 }
 0x1af   : > { %v2056_v61 = vpop.f32.mrb[12].mxu0 }
 0x1b0   : > { %v2078_v62 = vpop.f32.mrb[12].mxu1  ;;  %v2057_v63 = vpop.f32.mrb[13].mxu0 }
 0x1b1   : > { %v2058_v1 = vadd.f32 %v2057_v63, %v2056_v61  ;;  %v2079_v2 = vpop.f32.mrb[13].mxu1  ;;  %v2059_v3 = vpop.f32.mrb[14].mxu0 }
 0x1b2   : > { %v2080_v4 = vadd.f32 %v2079_v2, %v2078_v62  ;;  %v2081_v5 = vpop.f32.mrb[14].mxu1  ;;  %v2060_v6 = vpop.f32.mrb[15].mxu0 }
 0x1b3   : > { %v1572_v7 = vadd.f32 %v2058_v1, %v1532_v59  ;;  %v2082_v8 = vpop.f32.mrb[15].mxu1 }
 0x1b5   : > { %v1612_v9 = vadd.f32 %v2080_v4, %v1572_v7 }
 0x1b7   : > { %v1626_v10 = vsel %vm1623_vm0, %v1612_v9, -inf }
 0x1b8   : > { %v1628_v11 = vrot.slane %v1626_v10, 4 }
 0x1ba   : > { %v1629_v12 = vmax.f32 %v1626_v10, %v1628_v11 }
 0x1bc   : > { %v1630_v13 = vrot.slane %v1629_v12, 2 }
 0x1be   : > { %v1631_v14 = vmax.f32 %v1629_v12, %v1630_v13 }
 0x1c0   : > { %v1632_v15 = vrot.slane %v1631_v14, 1 }
 0x1c2   : > { %v1633_v17 = vmax.f32 %v1631_v14, %v1632_v15 }
 0x1c4   : > { %v1634_v18 = vmax.f32 %v1627_v16, %v1633_v17 }
 0x1c6   : > { %1635 = vst [vmem:[#allocation2] sm:$0x1] %v1634_v18 }
 0x1cd   : > { %v1639_v19 = vld [vmem:[#allocation2] sm:$0x1] }
 0x1ce   : > { %1640 = vst [vmem:[%s201_s19] sm:$0x1] %v1639_v19 }
 0x1cf   : > { %2375 = shalt.err (!%p2372_p5)
}
 0x1d0   : > { %s2376_s23 = scalar_lea.hbm %s2647_s6, 16  ;;  %s2380_s3 = scalar_lea.hbm %s2698_s2, 32 }
 0x1d1   : > { %p2377_p9 = scmp.ne.s32.totalorder %s2647_s6, %s2376_s23  ;;  %p2381_p7 = scmp.lt.u32.totalorder %s2647_s6, %s2698_s2 }
 0x1d2   : > { %p2382_p3 = scmp.lt.u32.totalorder %s2380_s3, %s2376_s23  ;;  %p2384_p4 = scmp.lt.u32.totalorder %s2376_s23, %s2647_s6 }
 0x1d3   : > { %p2378_p1 = pnand %p2377_p9, %p2567_p10 }
 0x1d4   : > { %p2383_p13 = por %p2382_p3, %p2381_p7 }
 0x1d5   : > { %p2379_p2 = pneg %p2378_p1 }
 0x1d6   : > { %p2385_p6 = por %p2384_p4, %p2383_p13 }
 0x1d8   : > { %p2386_p8 = pnand %p2385_p6, %p2379_p2 }
 0x1da   : > { %2389 = shalt.err (!%p2386_p8)
}
 0x1db   : > { %2090 = dma.vmem_to_hbm [thread:$0]  (%p2567_p10), %s2649_s21, 16, %s2647_s6, %s1642_s7  }
 0x1dc PF: > { %s1668_s15 = sand.u32 1, %s2428_s9   ;;  %p2716_p12 = scmp.ne.s32.totalorder %s2706_s20, 0 }
 0x1dd   : > { %p2717_p11 = scmp.ge.s32.totalorder %s2448_s14, 2  ;;  %s1669_s16 = scalar_lea.sflag [#allocation5], %s1668_s15 }
 0x1df   : > { %p2101_p0 = pnand %p2717_p11, %p2716_p12 }
 0x1e1   : > { %2423 = dma.done.wait (!%p2101_p0), %s1669_s16, 16  }
 0x1e2   : > { %2425 = vsyncadd (!%p2101_p0), %s1669_s16, 4294967280  ;;  %s19_s14 = sadd.s32 1, %s2448_s14   ;;  %s2718_s9 = smov %s2432_s10 }
 0x1e3   : > { %p16_p5 = scmp.ge.s32.totalorder %s19_s14, 4   ;;  %s2719_s10 = smov %s2436_s11 }
 0x1e4   : > { %s2720_s11 = smov %s2576_s28  ;;  %s2721_s12 = smov %s2444_s13 }
 0x1e5   : > { %s2722_s13 = smov %s2724_s25  ;;  %18 = sbr.rel (!%p16_p5) target bundleno = 7 (0x7), region = 85 }
 0x1ec   :  { %1673 = vsyncpa [#allocation4], 1 }
 0x1ed   :  { %1675 = vsyncpa [#allocation4 + $0x1], 1 }
 0x1ee   :  { %1676 = vsyncpa [#allocation7], 1 }
 0x1ef   :  { %1677 = vsyncpa [#allocation5], 1 }
 0x1f0   :  { %1679 = vsyncpa [#allocation5 + $0x1], 1 }

// kernel: tpu_custom_call.1
= control target key start
LH: loop header
LB: loop body
LE: loop exit
PB: predicated region body
PF: predicated region fallthrough
CT: control target
= control target key end

     0   :  { %7 = vsyncpa [#allocation4], 0  ;;  %s2696_s0 = inlined_call_operand.hbm [shape: bf16[2,8,2048], index: 0, kind: input, shape index: {}]   ;;  %s2697_s1 = inlined_call_operand.hbm [shape: bf16[2048,128], index: 1, kind: input, shape index: {}]   ;;  %s2698_s2 = inlined_call_operand.hbm [shape: f32[1,2,1,128], index: 2, kind: output, shape index: {}]  }
   0x1   :  { %9 = vsyncpa [#allocation4 + $0x1], 0 }
   0x2   :  { %10 = vsyncpa [#allocation7], 0 }
   0x3   :  { %11 = vsyncpa [#allocation5], 0 }
   0x4   :  { %13 = vsyncpa [#allocation5 + $0x1], 0  ;;  %s2471_s9 = smov 0   ;;  %s2473_s10 = smov 0  }
   0x5   :  { %s2475_s11 = smov 0   ;;  %s2477_s12 = smov 0  }
   0x6   :  { %s2479_s13 = smov 0   ;;  %s2481_s14 = smov 0  }
   0x7 LB: > { %s1749_s15 = sadd.s32 4294967295, %s2448_s14   ;;  %s1750_s16 = sadd.s32 4294967294, %s2448_s14   ;;  %s2448_s14 = sphi %s2481_s14, %s19_s14   ;;  %s2444_s13 = sphi %s2479_s13, %s2722_s13   ;;  %s2440_s12 = sphi %s2477_s12, %s2721_s12   ;;  %s2436_s11 = sphi %s2475_s11, %s2720_s11   ;;  %s2432_s10 = sphi %s2473_s10, %s2719_s10   ;;  %s2428_s9 = sphi %s2471_s9, %s2718_s9  }
   0x8   : > { %p62_p0 = scmp.ne.s32.totalorder %s2432_s10, %s2428_s9  ;;  %p2505_p1 = scmp.eq.s32.totalorder %s1749_s15, 0 }
   0x9   : > { %p2509_p2 = scmp.eq.s32.totalorder %s1749_s15, 1  ;;  %p115_p3 = scmp.eq.s32.totalorder %s1750_s16, 1 }
   0xa   : > { %s2703_s17 = scalar_select %p2505_p1, 1, 0 }
   0xb   : > { %s2704_s18 = scalar_select %p2509_p2, 1, 0 }
   0xc   : > { %p2515_p4 = por %p2505_p1, %p62_p0  ;;  %p1751_p5 = scmp.ge.s32.totalorder %s2448_s14, 1 }
   0xd   : > { %p2520_p6 = por %p115_p3, %p62_p0  ;;  %p122_p7 = scmp.lt.s32.totalorder %s2448_s14, 3 }
   0xe   : > { %s2705_s19 = scalar_select %p2515_p4, 1, 0 }
   0xf   : > { %s2706_s20 = scalar_select %p2520_p6, 1, 0 }
  0x10   : > { %p2525_p8 = pnand %p1751_p5, %p122_p7  ;;  %s2450_s22 = smov [#allocation6]  }
  0x11   : > { %s134_s23 = sshll.u32 %s2450_s22, 4  ;;  %s34_s25 = sadd.s32 1, %s2444_s13  ;;  %s135_s23 = int_to_ptr.vmem [resolvable:$true] %s134_s23 }
  0x12   : > { %s2707_s21 = scalar_select %p2525_p8, 1, 0 }
  0x13   : > { %p2092_p9 = pneg %p2525_p8  ;;  %s2304_s28 = scalar_lea.hbm %s2697_s1, 16384 }
  0x14   : > { %p2305_p12 = scmp.ne.s32.totalorder %s2697_s1, %s2304_s28  ;;  %p2311_p5 = scmp.lt.u32.totalorder %s2304_s28, %s2697_s1 }
  0x15   : > { %p2534_p11 = pnand %p2092_p9, %p2505_p1 }
  0x17   : > { %p2306_p13 = pneg %p2534_p11 }
  0x19   : > { %p2307_p0 = pnand %p2306_p13, %p2305_p12 }
  0x1b   : > { %p2308_p3 = pneg %p2307_p0 }
  0x1d   : > { %p2313_p7 = pnand %p2311_p5, %p2308_p3 }
  0x1f   : > { %2316 = shalt.err (!%p2313_p7)
}
  0x20   : > { %s2317_s5 = scalar_lea.vmem %s135_s23, 16384  ;;  %p2325_p1 = scmp.lt.s32.totalorder %s135_s23, %s135_s23 }
  0x21   : > { %p2318_p9 = scmp.ne.s32.totalorder %s135_s23, %s2317_s5  ;;  %p2326_p4 = scmp.lt.s32.totalorder %s2317_s5, %s2317_s5 }
  0x23   : > { %p2320_p10 = pnand %p2318_p9, %p2306_p13  ;;  %p2327_p8 = por %p2326_p4, %p2325_p1 }
  0x25   : > { %p2321_p6 = pneg %p2320_p10 }
  0x27   : > { %p2328_p2 = pnand %p2327_p8, %p2321_p6 }
  0x29   : > { %2331 = shalt.err (!%p2328_p2)
}
  0x2a   : > { %s2451_s6 = smov 64   ;;  %s2452_s7 = smov 4  }
  0x2b   : > { %2095 = dma.hbm_to_vmem [thread:$0]  (!%p2534_p11), %s2697_s1, 16384, %s135_s23, [#allocation7], %s2451_s6, %s2451_s6, %s2452_s7  }
  0x2c   : > { %p36_p1 = scmp.ge.s32.totalorder %s34_s25, 2  ;;  %s49_s16 = sadd.s32 1, %s2436_s11 }
  0x2d   : > { %p56_p2 = scmp.ne.s32.totalorder %s2436_s11, %s2432_s10  ;;  %p57_p4 = scmp.eq.s32.totalorder %s2448_s14, 0 }
  0x2e   : > { %s2724_s25 = smov (%p36_p1, %s34_s25), 0  ;;  %p2710_p8 = scmp.ne.s32.totalorder %s2704_s18, 0 }
  0x2f   : > { %p2561_p6 = por %p57_p4, %p56_p2  ;;  %s44_s24 = ssub.s32 %s2444_s13, %s2724_s25 }
  0x30   : > { %p2567_p10 = por %p2710_p8, %p56_p2  ;;  %p2105_p12 = scmp.lt.s32.totalorder %s2448_s14, 2 }
  0x31   : > { %p47_p11 = scmp.eq.s32.totalorder %s44_s24, 0  ;;  %s148_s23 = sand.u32 1, %s2436_s11  }
  0x32   : > { %s1754_s27 = sshll.u32 %s148_s23, 6  ;;  %s1907_s29 = sshll.u32 %s2444_s13, 10 }
  0x33   : > { %s2576_s28 = scalar_select %p47_p11, %s2436_s11, %s49_s16  }
  0x34   : > { %s2582_s4 = scalar_lea.hbm %s2696_s0, %s1907_s29  ;;  %s152_s18 = scalar_lea.vmem [#allocation3], %s1754_s27 }
  0x35   : > { %s163_s5 = sshll.u32 %s152_s18, 4  ;;  %p2588_p13 = pnand %p2105_p12, %p2561_p6  ;;  %s2584_s5 = int_to_ptr.vmem [resolvable:$true] %s163_s5 }
  0x36   : > { %s149_s7 = scalar_lea.sflag [#allocation4], %s148_s23  ;;  %s2332_s8 = scalar_lea.hbm %s2582_s4, 1024 }
  0x37   : > { %p2333_p0 = scmp.ne.s32.totalorder %s2582_s4, %s2332_s8  ;;  %p2334_p3 = pneg %p2588_p13 }
  0x38   : > { %s2337_s24 = scalar_lea.hbm %s2696_s0, 2048  ;;  %p2338_p9 = scmp.lt.u32.totalorder %s2582_s4, %s2696_s0 }
  0x39   : > { %p2335_p5 = pnand %p2334_p3, %p2333_p0  ;;  %p2339_p1 = scmp.lt.u32.totalorder %s2337_s24, %s2332_s8 }
  0x3a   : > { %p2341_p4 = scmp.lt.u32.totalorder %s2332_s8, %s2582_s4 }
  0x3b   : > { %p2336_p7 = pneg %p2335_p5  ;;  %p2340_p2 = por %p2339_p1, %p2338_p9 }
  0x3d   : > { %p2342_p6 = por %p2341_p4, %p2340_p2 }
  0x3f   : > { %p2343_p8 = pnand %p2342_p6, %p2336_p7 }
  0x41   : > { %2346 = shalt.err (!%p2343_p8)
}
  0x42   : > { %s2347_s23 = scalar_lea.vmem %s2584_s5, 1024  ;;  %s2453_s29 = smov [#allocation3]  }
  0x43   : > { %p2348_p12 = scmp.ne.s32.totalorder %s2584_s5, %s2347_s23  ;;  %s2352_s30 = sshll.u32 %s2453_s29, 4  ;;  %s2353_s30 = int_to_ptr.vmem [resolvable:$false] %s2352_s30 }
  0x44   : > { %s2354_s3 = scalar_lea.vmem %s2353_s30, 2048  ;;  %p2355_p5 = scmp.lt.s32.totalorder %s2584_s5, %s2353_s30 }
  0x45   : > { %p2350_p11 = pnand %p2348_p12, %p2334_p3  ;;  %p2356_p9 = scmp.lt.s32.totalorder %s2354_s3, %s2347_s23 }
  0x47   : > { %p2351_p0 = pneg %p2350_p11  ;;  %p2357_p1 = por %p2356_p9, %p2355_p5 }
  0x49   : > { %p2358_p2 = pnand %p2357_p1, %p2351_p0 }
  0x4b   : > { %2361 = shalt.err (!%p2358_p2)
}
  0x4c   : > { %2099 = dma.hbm_to_vmem [thread:$0]  (!%p2588_p13), %s2582_s4, 1024, %s2584_s5, %s149_s7  }
  0x4d   : > { %p2713_p7 = scmp.ne.s32.totalorder %s2707_s21, 0 }
  0x4e   : > { %s2620_s18 = sand.u32 (!%p2713_p7), 1, %s2432_s10   ;;  %p2714_p3 = scmp.ne.s32.totalorder (!%p2713_p7), %s2705_s19, 0 }
  0x4f   : > { %172 = sbr.rel (%p2713_p7) target bundleno = 476 (0x1dc), region = 28  ;;  %s1758_s8 = sshll.u32 (!%p2713_p7), %s2620_s18, 6 }
  0x50   : > { %s175_s15 = scalar_lea.sflag (!%p2713_p7), [#allocation4], %s2620_s18  ;;  %s2624_s16 = scalar_lea.vmem (!%p2713_p7), [#allocation3], %s1758_s8 }
  0x56   : > { %2415 = dma.done.wait (%p2714_p3), %s175_s15, 1024  }
  0x57   : > { %2417 = vsyncadd (%p2714_p3), %s175_s15, 4294966272  ;;  %p2715_p13 = scmp.ne.s32.totalorder %s2703_s17, 0 }
  0x59   : > { %2419 = dma.done.wait (%p2715_p13), [#allocation7], 16384  }
  0x5a   : > { %2421 = vsyncadd (%p2715_p13), [#allocation7], 4294950912  ;;  %v2160_v0 = vld [vmem:[#allocation6 + $0x40] sm:$0xff]   ;;  %v2164_v4 = vld [vmem:[#allocation6 + $0x48] sm:$0xff]   ;;  %s1904_s17 = sshll.u32 %s2440_s12, 4  ;;  %s201_s19 = scalar_lea.vmem [#allocation8], %s2620_s18 }
  0x5b   : > { %v2161_v1 = vld [vmem:[#allocation6 + $0xc0] sm:$0xff]   ;;  %1908 = vmatprep.subr.bf16.mxu0 %v2160_v0  ;;  %v2165_v5 = vld [vmem:[#allocation6 + $0xc8] sm:$0xff]   ;;  %v2168_v8 = vld [vmem:[#allocation6 + $0x50] sm:$0xff]   ;;  %s1656_s21 = sshll.u32 %s201_s19, 4  ;;  %s2647_s6 = scalar_lea.hbm %s2698_s2, %s1904_s17  ;;  %s2649_s21 = int_to_ptr.vmem [resolvable:$true] %s1656_s21 }
  0x5c   : > { %v2162_v2 = vld [vmem:[#allocation6] sm:$0xff]   ;;  %1930 = vmatprep.subr.bf16.mxu1 %v2161_v1  ;;  %v2166_v6 = vld [vmem:[#allocation6 + $0x8] sm:$0xff]   ;;  %v2169_v9 = vld [vmem:[#allocation6 + $0xd0] sm:$0xff]   ;;  %s1642_s7 = scalar_lea.sflag [#allocation5], %s2620_s18  ;;  %s2362_s24 = scalar_lea.vmem %s2649_s21, 16 }
  0x5d   : > { %v2163_v3 = vld [vmem:[#allocation6 + $0x80] sm:$0xff]   ;;  %1909 = vmatpush3.bf16.msra.mxu0 %v2162_v2  ;;  %v2167_v7 = vld [vmem:[#allocation6 + $0x88] sm:$0xff]   ;;  %v2170_v10 = vld [vmem:[#allocation6 + $0x10] sm:$0xff]   ;;  %p2363_p4 = scmp.ne.s32.totalorder %s2649_s21, %s2362_s24  ;;  %s2455_s12 = smov [#allocation8]  }
  0x5e   : > { %1931 = vmatpush3.bf16.msra.mxu1 %v2163_v3  ;;  %1910 = vmatprep.subr.bf16.mxu0 %v2164_v4  ;;  %v2171_v11 = vld [vmem:[#allocation6 + $0x90] sm:$0xff]   ;;  %v2172_v12 = vld [vmem:[#allocation6 + $0x58] sm:$0xff]   ;;  %v2176_v16 = vld [vmem:[#allocation6 + $0x60] sm:$0xff]   ;;  %s2366_s22 = sshll.u32 %s2455_s12, 4  ;;  %s2367_s22 = int_to_ptr.vmem [resolvable:$false] %s2366_s22 }
  0x5f   : > { %1932 = vmatprep.subr.bf16.mxu1 %v2165_v5  ;;  %v2173_v13 = vld [vmem:[#allocation6 + $0xd8] sm:$0xff]   ;;  %v2177_v17 = vld [vmem:[#allocation6 + $0xe0] sm:$0xff]   ;;  %v2180_v20 = vld [vmem:[#allocation6 + $0x68] sm:$0xff]   ;;  %p2364_p6 = pnand %p2363_p4, %p2567_p10  ;;  %s2368_s27 = scalar_lea.vmem %s2367_s22, 32 }
  0x60   : > { %v2174_v14 = vld [vmem:[#allocation6 + $0x18] sm:$0xff]   ;;  %v2178_v18 = vld [vmem:[#allocation6 + $0x20] sm:$0xff]   ;;  %v2181_v21 = vld [vmem:[#allocation6 + $0xe8] sm:$0xff]   ;;  %p2369_p12 = scmp.lt.s32.totalorder %s2649_s21, %s2367_s22  ;;  %p2370_p11 = scmp.lt.s32.totalorder %s2368_s27, %s2362_s24 }
  0x61   : > { %1911 = vmatpush3.bf16.msra.mxu0 %v2166_v6  ;;  %v2175_v15 = vld [vmem:[#allocation6 + $0x98] sm:$0xff]   ;;  %v2179_v19 = vld [vmem:[#allocation6 + $0xa0] sm:$0xff]   ;;  %v2182_v22 = vld [vmem:[#allocation6 + $0x28] sm:$0xff]   ;;  %p2365_p8 = pneg %p2364_p6 }
  0x62   : > { %1933 = vmatpush3.bf16.msra.mxu1 %v2167_v7  ;;  %1912 = vmatprep.subr.bf16.mxu0 %v2168_v8  ;;  %v2183_v23 = vld [vmem:[#allocation6 + $0xa8] sm:$0xff]   ;;  %v2184_v24 = vld [vmem:[#allocation6 + $0x70] sm:$0xff]   ;;  %v2188_v28 = vld [vmem:[#allocation6 + $0x78] sm:$0xff]   ;;  %p2371_p0 = por %p2370_p11, %p2369_p12 }
  0x63   : > { %1934 = vmatprep.subr.bf16.mxu1 %v2169_v9  ;;  %v2185_v25 = vld [vmem:[#allocation6 + $0xf0] sm:$0xff]   ;;  %v2189_v29 = vld [vmem:[#allocation6 + $0xf8] sm:$0xff]   ;;  %v209_v32 = vld [vmem:[%s2624_s16] sm:$0xff] }
  0x64   : > { %v2186_v26 = vld [vmem:[#allocation6 + $0x30] sm:$0xff]   ;;  %v2190_v30 = vld [vmem:[#allocation6 + $0x38] sm:$0xff]   ;;  %v210_v33 = vld [vmem:[%s2624_s16 + $0x8] sm:$0xff]  ;;  %v1760_v34 = vcombine.low %v209_v32, %v209_v32  ;;  %v1761_v35 = vcombine.high %v209_v32, %v209_v32  ;;  %p2372_p5 = pnand %p2371_p0, %p2365_p8 }
  0x65   : > { %1913 = vmatpush3.bf16.msra.mxu0 %v2170_v10  ;;  %v2187_v27 = vld [vmem:[#allocation6 + $0xb0] sm:$0xff]   ;;  %v2191_v31 = vld [vmem:[#allocation6 + $0xb8] sm:$0xff]   ;;  %v1762_v36 = vcombine.low %v210_v33, %v210_v33  ;;  %v1763_v37 = vcombine.high %v210_v33, %v210_v33  ;;  %v2196_v38 = vld [vmem:[#allocation6 + $0x140] sm:$0xff]  }
  0x66   : > { %1935 = vmatpush3.bf16.msra.mxu1 %v2171_v11  ;;  %1914 = vmatprep.subr.bf16.mxu0 %v2172_v12  ;;  %v2197_v39 = vld [vmem:[#allocation6 + $0x1c0] sm:$0xff]   ;;  %v2200_v42 = vld [vmem:[#allocation6 + $0x148] sm:$0xff]   ;;  %v2204_v46 = vld [vmem:[#allocation6 + $0x150] sm:$0xff]  }
  0x67   : > { %1936 = vmatprep.subr.bf16.mxu1 %v2173_v13  ;;  %1329 = vmatprep.mubr.bf16.mxu0 %v1761_v35  ;;  %v2198_v40 = vld [vmem:[#allocation6 + $0x100] sm:$0xff]   ;;  %v2201_v43 = vld [vmem:[#allocation6 + $0x1c8] sm:$0xff]   ;;  %v2205_v47 = vld [vmem:[#allocation6 + $0x1d0] sm:$0xff]  }
  0x68   : > { %1369 = vmatprep.mubr.bf16.mxu1 %v1763_v37  ;;  %v2199_v41 = vld [vmem:[#allocation6 + $0x180] sm:$0xff]   ;;  %v2202_v44 = vld [vmem:[#allocation6 + $0x108] sm:$0xff]   ;;  %v2206_v48 = vld [vmem:[#allocation6 + $0x110] sm:$0xff]  }
  0x69   : > { %1915 = vmatpush3.bf16.msra.mxu0 %v2174_v14  ;;  %v2203_v45 = vld [vmem:[#allocation6 + $0x188] sm:$0xff]   ;;  %v2207_v49 = vld [vmem:[#allocation6 + $0x190] sm:$0xff]   ;;  %v2208_v50 = vld [vmem:[#allocation6 + $0x158] sm:$0xff]  }
  0x6a   : > { %1937 = vmatpush3.bf16.msra.mxu1 %v2175_v15  ;;  %1916 = vmatprep.subr.bf16.mxu0 %v2176_v16  ;;  %v2209_v51 = vld [vmem:[#allocation6 + $0x1d8] sm:$0xff]   ;;  %v2212_v54 = vld [vmem:[#allocation6 + $0x160] sm:$0xff]   ;;  %v2216_v58 = vld [vmem:[#allocation6 + $0x168] sm:$0xff]  }
  0x6b   : > { %1938 = vmatprep.subr.bf16.mxu1 %v2177_v17  ;;  %v2210_v52 = vld [vmem:[#allocation6 + $0x118] sm:$0xff]   ;;  %v2213_v55 = vld [vmem:[#allocation6 + $0x1e0] sm:$0xff]   ;;  %v2217_v59 = vld [vmem:[#allocation6 + $0x1e8] sm:$0xff]  }
  0x6c   : > { %v2211_v53 = vld [vmem:[#allocation6 + $0x198] sm:$0xff]   ;;  %v2214_v56 = vld [vmem:[#allocation6 + $0x120] sm:$0xff]   ;;  %v2218_v60 = vld [vmem:[#allocation6 + $0x128] sm:$0xff]  }
  0x6d   : > { %1917 = vmatpush3.bf16.msra.mxu0 %v2178_v18  ;;  %v2215_v57 = vld [vmem:[#allocation6 + $0x1a0] sm:$0xff]   ;;  %v2219_v61 = vld [vmem:[#allocation6 + $0x1a8] sm:$0xff]   ;;  %v2220_v62 = vld [vmem:[#allocation6 + $0x170] sm:$0xff]  }
  0x6e   : > { %1939 = vmatpush3.bf16.msra.mxu1 %v2179_v19  ;;  %1918 = vmatprep.subr.bf16.mxu0 %v2180_v20  ;;  %v2221_v63 = vld [vmem:[#allocation6 + $0x1f0] sm:$0xff]   ;;  %v2224_v2 = vld [vmem:[#allocation6 + $0x178] sm:$0xff]   ;;  %v2232_v12 = vld [vmem:[#allocation6 + $0x240] sm:$0xff]  }
  0x6f   : > { %1940 = vmatprep.subr.bf16.mxu1 %v2181_v21  ;;  %v2222_v0 = vld [vmem:[#allocation6 + $0x130] sm:$0xff]   ;;  %v2225_v3 = vld [vmem:[#allocation6 + $0x1f8] sm:$0xff]   ;;  %v2233_v13 = vld [vmem:[#allocation6 + $0x2c0] sm:$0xff]  }
  0x70   : > { %v2223_v1 = vld [vmem:[#allocation6 + $0x1b0] sm:$0xff]   ;;  %v2226_v4 = vld [vmem:[#allocation6 + $0x138] sm:$0xff]   ;;  %v2234_v14 = vld [vmem:[#allocation6 + $0x200] sm:$0xff]  }
  0x71   : > { %1919 = vmatpush3.bf16.msra.mxu0 %v2182_v22  ;;  %v2227_v5 = vld [vmem:[#allocation6 + $0x1b8] sm:$0xff]   ;;  %v211_v6 = vld [vmem:[%s2624_s16 + $0x10] sm:$0xff]  ;;  %v2235_v15 = vld [vmem:[#allocation6 + $0x280] sm:$0xff]  }
  0x72   : > { %1941 = vmatpush3.bf16.msra.mxu1 %v2183_v23  ;;  %1920 = vmatprep.subr.bf16.mxu0 %v2184_v24  ;;  %v1764_v7 = vcombine.low %v211_v6, %v211_v6  ;;  %v1765_v8 = vcombine.high %v211_v6, %v211_v6  ;;  %v212_v9 = vld [vmem:[%s2624_s16 + $0x18] sm:$0xff]  ;;  %v2236_v16 = vld [vmem:[#allocation6 + $0x248] sm:$0xff]   ;;  %v2240_v20 = vld [vmem:[#allocation6 + $0x250] sm:$0xff]  }
  0x73   : > { %1942 = vmatprep.subr.bf16.mxu1 %v2185_v25  ;;  %v1766_v10 = vcombine.low %v212_v9, %v212_v9  ;;  %v1767_v11 = vcombine.high %v212_v9, %v212_v9  ;;  %v2237_v17 = vld [vmem:[#allocation6 + $0x2c8] sm:$0xff]   ;;  %v2241_v21 = vld [vmem:[#allocation6 + $0x2d0] sm:$0xff]   ;;  %v2244_v24 = vld [vmem:[#allocation6 + $0x258] sm:$0xff]  }
  0x74   : > { %v2238_v18 = vld [vmem:[#allocation6 + $0x208] sm:$0xff]   ;;  %v2242_v22 = vld [vmem:[#allocation6 + $0x210] sm:$0xff]   ;;  %v2245_v25 = vld [vmem:[#allocation6 + $0x2d8] sm:$0xff]  }
  0x75   : > { %1921 = vmatpush3.bf16.msra.mxu0 %v2186_v26  ;;  %v2239_v19 = vld [vmem:[#allocation6 + $0x288] sm:$0xff]   ;;  %v2243_v23 = vld [vmem:[#allocation6 + $0x290] sm:$0xff]   ;;  %v2246_v26 = vld [vmem:[#allocation6 + $0x218] sm:$0xff]  }
  0x76   : > { %1943 = vmatpush3.bf16.msra.mxu1 %v2187_v27  ;;  %1922 = vmatprep.subr.bf16.mxu0 %v2188_v28  ;;  %v2247_v27 = vld [vmem:[#allocation6 + $0x298] sm:$0xff]   ;;  %v2248_v28 = vld [vmem:[#allocation6 + $0x260] sm:$0xff]   ;;  %v2252_v32 = vld [vmem:[#allocation6 + $0x268] sm:$0xff]  }
  0x77   : > { %1944 = vmatprep.subr.bf16.mxu1 %v2189_v29  ;;  %v2249_v29 = vld [vmem:[#allocation6 + $0x2e0] sm:$0xff]   ;;  %v2253_v33 = vld [vmem:[#allocation6 + $0x2e8] sm:$0xff]   ;;  %v2257_v37 = vld [vmem:[#allocation6 + $0x2f0] sm:$0xff]  }
  0x78   : > { %v2255_v35 = vld [vmem:[#allocation6 + $0x2a8] sm:$0xff]  }
  0x79   : > { %1923 = vmatpush3.bf16.msra.mxu0 %v2190_v30  ;;  %v2250_v30 = vld [vmem:[#allocation6 + $0x220] sm:$0xff]   ;;  %v2288_v6 = vld [vmem:[#allocation6 + $0x368] sm:$0xff]  }
  0x7a   : > { %1945 = vmatpush3.bf16.msra.mxu1 %v2191_v31  ;;  %1952 = vmatprep.subr.bf16.mxu0 %v2196_v38  ;;  %v2251_v31 = vld [vmem:[#allocation6 + $0x2a0] sm:$0xff]   ;;  %v2258_v38 = vld [vmem:[#allocation6 + $0x230] sm:$0xff]   ;;  %v2291_v9 = vld [vmem:[#allocation6 + $0x3a8] sm:$0xff]  }
  0x7b   : > { %1974 = vmatprep.subr.bf16.mxu1 %v2197_v39  ;;  %v2259_v39 = vld [vmem:[#allocation6 + $0x2b0] sm:$0xff]  }
  0x7c   : > { %1330 = vmatmul.mubr.bf16.vlgmr.msra.gmra.mrb[0].mxu0 %v1760_v34  ;;  %v2254_v34 = vld [vmem:[#allocation6 + $0x228] sm:$0xff]  }
  0x7d   : > { %1370 = vmatmul.mubr.bf16.vlgmr.msra.gmra.mrb[0].mxu1 %v1762_v36  ;;  %1953 = vmatpush3.bf16.msra.mxu0 %v2198_v40  ;;  %v2256_v36 = vld [vmem:[#allocation6 + $0x270] sm:$0xff]   ;;  %v2260_v40 = vld [vmem:[#allocation6 + $0x278] sm:$0xff]  }
  0x7e   : > { %1975 = vmatpush3.bf16.msra.mxu1 %v2199_v41  ;;  %1954 = vmatprep.subr.bf16.mxu0 %v2200_v42  ;;  %v2261_v41 = vld [vmem:[#allocation6 + $0x2f8] sm:$0xff]  }
  0x7f   : > { %1976 = vmatprep.subr.bf16.mxu1 %v2201_v43  ;;  %1409 = vmatprep.mubr.bf16.mxu0 %v1765_v8  ;;  %v2262_v42 = vld [vmem:[#allocation6 + $0x238] sm:$0xff]   ;;  %v2290_v8 = vld [vmem:[#allocation6 + $0x328] sm:$0xff]  }
  0x80   : > { %1449 = vmatprep.mubr.bf16.mxu1 %v1767_v11  ;;  %v2263_v43 = vld [vmem:[#allocation6 + $0x2b8] sm:$0xff]   ;;  %v2293_v11 = vld [vmem:[#allocation6 + $0x3f0] sm:$0xff]  }
  0x81   : > { %1955 = vmatpush3.bf16.msra.mxu0 %v2202_v44  ;;  %v213_v44 = vld [vmem:[%s2624_s16 + $0x20] sm:$0xff] }
  0x82   : > { %1977 = vmatpush3.bf16.msra.mxu1 %v2203_v45  ;;  %1956 = vmatprep.subr.bf16.mxu0 %v2204_v46  ;;  %v214_v45 = vld [vmem:[%s2624_s16 + $0x28] sm:$0xff]  ;;  %v1768_v46 = vcombine.low %v213_v44, %v213_v44 }
  0x83   : > { %1978 = vmatprep.subr.bf16.mxu1 %v2205_v47  ;;  %v1769_v47 = vcombine.high %v213_v44, %v213_v44 }
  0x85   : > { %1957 = vmatpush3.bf16.msra.mxu0 %v2206_v48  ;;  %v1770_v48 = vcombine.low %v214_v45, %v214_v45 }
  0x86   : > { %1979 = vmatpush3.bf16.msra.mxu1 %v2207_v49  ;;  %1958 = vmatprep.subr.bf16.mxu0 %v2208_v50  ;;  %v1771_v49 = vcombine.high %v214_v45, %v214_v45  ;;  %v2268_v50 = vld [vmem:[#allocation6 + $0x340] sm:$0xff]  }
  0x87   : > { %1980 = vmatprep.subr.bf16.mxu1 %v2209_v51  ;;  %v2269_v51 = vld [vmem:[#allocation6 + $0x3c0] sm:$0xff]  }
  0x89   : > { %1959 = vmatpush3.bf16.msra.mxu0 %v2210_v52  ;;  %v2270_v52 = vld [vmem:[#allocation6 + $0x300] sm:$0xff]  }
  0x8a   : > { %1981 = vmatpush3.bf16.msra.mxu1 %v2211_v53  ;;  %1960 = vmatprep.subr.bf16.mxu0 %v2212_v54  ;;  %v2271_v53 = vld [vmem:[#allocation6 + $0x380] sm:$0xff]   ;;  %v2272_v54 = vld [vmem:[#allocation6 + $0x348] sm:$0xff]  }
  0x8b   : > { %1982 = vmatprep.subr.bf16.mxu1 %v2213_v55  ;;  %v2273_v55 = vld [vmem:[#allocation6 + $0x3c8] sm:$0xff]  }
  0x8d   : > { %1961 = vmatpush3.bf16.msra.mxu0 %v2214_v56  ;;  %v2274_v56 = vld [vmem:[#allocation6 + $0x308] sm:$0xff]  }
  0x8e   : > { %1983 = vmatpush3.bf16.msra.mxu1 %v2215_v57  ;;  %1962 = vmatprep.subr.bf16.mxu0 %v2216_v58  ;;  %v2275_v57 = vld [vmem:[#allocation6 + $0x388] sm:$0xff]   ;;  %v2276_v58 = vld [vmem:[#allocation6 + $0x350] sm:$0xff]  }
  0x8f   : > { %1984 = vmatprep.subr.bf16.mxu1 %v2217_v59  ;;  %v2277_v59 = vld [vmem:[#allocation6 + $0x3d0] sm:$0xff]  }
  0x91   : > { %1963 = vmatpush3.bf16.msra.mxu0 %v2218_v60  ;;  %v2278_v60 = vld [vmem:[#allocation6 + $0x310] sm:$0xff]  }
  0x92   : > { %1985 = vmatpush3.bf16.msra.mxu1 %v2219_v61  ;;  %1964 = vmatprep.subr.bf16.mxu0 %v2220_v62  ;;  %v2279_v61 = vld [vmem:[#allocation6 + $0x390] sm:$0xff]   ;;  %v2280_v62 = vld [vmem:[#allocation6 + $0x358] sm:$0xff]  }
  0x93   : > { %1986 = vmatprep.subr.bf16.mxu1 %v2221_v63  ;;  %v2281_v63 = vld [vmem:[#allocation6 + $0x3d8] sm:$0xff]  }
  0x95   : > { %1965 = vmatpush3.bf16.msra.mxu0 %v2222_v0  ;;  %v2282_v0 = vld [vmem:[#allocation6 + $0x318] sm:$0xff]  }
  0x96   : > { %1987 = vmatpush3.bf16.msra.mxu1 %v2223_v1  ;;  %1966 = vmatprep.subr.bf16.mxu0 %v2224_v2  ;;  %v2283_v1 = vld [vmem:[#allocation6 + $0x398] sm:$0xff]   ;;  %v2284_v2 = vld [vmem:[#allocation6 + $0x360] sm:$0xff]  }
  0x97   : > { %1988 = vmatprep.subr.bf16.mxu1 %v2225_v3  ;;  %v2285_v3 = vld [vmem:[#allocation6 + $0x3e0] sm:$0xff]  }
  0x99   : > { %1967 = vmatpush3.bf16.msra.mxu0 %v2226_v4  ;;  %v2286_v4 = vld [vmem:[#allocation6 + $0x320] sm:$0xff]  }
  0x9a   : > { %1989 = vmatpush3.bf16.msra.mxu1 %v2227_v5  ;;  %1996 = vmatprep.subr.bf16.mxu0 %v2232_v12  ;;  %v2287_v5 = vld [vmem:[#allocation6 + $0x3a0] sm:$0xff]   ;;  %v2294_v12 = vld [vmem:[#allocation6 + $0x330] sm:$0xff]  }
  0x9b   : > { %2018 = vmatprep.subr.bf16.mxu1 %v2233_v13  ;;  %v2295_v13 = vld [vmem:[#allocation6 + $0x3b0] sm:$0xff]  }
  0x9c   : > { %1410 = vmatmul.mubr.bf16.vlgmr.msra.gmra.mrb[4].mxu0 %v1764_v7  ;;  %v2289_v7 = vld [vmem:[#allocation6 + $0x3e8] sm:$0xff]  }
  0x9d   : > { %1450 = vmatmul.mubr.bf16.vlgmr.msra.gmra.mrb[4].mxu1 %v1766_v10  ;;  %1997 = vmatpush3.bf16.msra.mxu0 %v2234_v14  ;;  %v2292_v10 = vld [vmem:[#allocation6 + $0x370] sm:$0xff]   ;;  %v2296_v14 = vld [vmem:[#allocation6 + $0x378] sm:$0xff]  }
  0x9e   : > { %2019 = vmatpush3.bf16.msra.mxu1 %v2235_v15  ;;  %1998 = vmatprep.subr.bf16.mxu0 %v2236_v16  ;;  %v2297_v15 = vld [vmem:[#allocation6 + $0x3f8] sm:$0xff]  }
  0x9f   : > { %2020 = vmatprep.subr.bf16.mxu1 %v2237_v17  ;;  %1489 = vmatprep.mubr.bf16.mxu0 %v1769_v47  ;;  %v2298_v16 = vld [vmem:[#allocation6 + $0x338] sm:$0xff]  }
  0xa0   : > { %1529 = vmatprep.mubr.bf16.mxu1 %v1771_v49  ;;  %v2299_v17 = vld [vmem:[#allocation6 + $0x3b8] sm:$0xff]  }
  0xa1   : > { %1999 = vmatpush3.bf16.msra.mxu0 %v2238_v18  ;;  %v215_v18 = vld [vmem:[%s2624_s16 + $0x30] sm:$0xff] }
  0xa2   : > { %2021 = vmatpush3.bf16.msra.mxu1 %v2239_v19  ;;  %2000 = vmatprep.subr.bf16.mxu0 %v2240_v20  ;;  %v216_v19 = vld [vmem:[%s2624_s16 + $0x38] sm:$0xff]  ;;  %v1772_v20 = vcombine.low %v215_v18, %v215_v18 }
  0xa3   : > { %2022 = vmatprep.subr.bf16.mxu1 %v2241_v21  ;;  %v1773_v21 = vcombine.high %v215_v18, %v215_v18 }
  0xa5   : > { %2001 = vmatpush3.bf16.msra.mxu0 %v2242_v22  ;;  %v1774_v22 = vcombine.low %v216_v19, %v216_v19 }
  0xa6   : > { %2023 = vmatpush3.bf16.msra.mxu1 %v2243_v23  ;;  %2002 = vmatprep.subr.bf16.mxu0 %v2244_v24  ;;  %v1775_v23 = vcombine.high %v216_v19, %v216_v19  ;;  %v2454_v24 = vmov -inf  }
  0xa7   : > { %2024 = vmatprep.subr.bf16.mxu1 %v2245_v25  ;;  %208 = vst [vmem:[#allocation2] sm:$0x1] %v2454_v24 }
  0xa9   : > { %2003 = vmatpush3.bf16.msra.mxu0 %v2246_v26 }
  0xaa   : > { %2025 = vmatpush3.bf16.msra.mxu1 %v2247_v27  ;;  %2004 = vmatprep.subr.bf16.mxu0 %v2248_v28 }
  0xab   : > { %2026 = vmatprep.subr.bf16.mxu1 %v2249_v29 }
  0xad   : > { %2005 = vmatpush3.bf16.msra.mxu0 %v2250_v30 }
  0xae   : > { %2027 = vmatpush3.bf16.msra.mxu1 %v2251_v31  ;;  %2006 = vmatprep.subr.bf16.mxu0 %v2252_v32 }
  0xaf   : > { %2028 = vmatprep.subr.bf16.mxu1 %v2253_v33 }
  0xb1   : > { %2007 = vmatpush3.bf16.msra.mxu0 %v2254_v34 }
  0xb2   : > { %2029 = vmatpush3.bf16.msra.mxu1 %v2255_v35  ;;  %2008 = vmatprep.subr.bf16.mxu0 %v2256_v36 }
  0xb3   : > { %2030 = vmatprep.subr.bf16.mxu1 %v2257_v37 }
  0xb5   : > { %2009 = vmatpush3.bf16.msra.mxu0 %v2258_v38 }
  0xb6   : > { %2031 = vmatpush3.bf16.msra.mxu1 %v2259_v39  ;;  %2010 = vmatprep.subr.bf16.mxu0 %v2260_v40 }
  0xb7   : > { %2032 = vmatprep.subr.bf16.mxu1 %v2261_v41 }
  0xb9   : > { %2011 = vmatpush3.bf16.msra.mxu0 %v2262_v42 }
  0xba   : > { %2033 = vmatpush3.bf16.msra.mxu1 %v2263_v43  ;;  %2040 = vmatprep.subr.bf16.mxu0 %v2268_v50 }
  0xbb   : > { %2062 = vmatprep.subr.bf16.mxu1 %v2269_v51 }
  0xbc   : > { %1490 = vmatmul.mubr.bf16.vlgmr.msra.gmra.mrb[8].mxu0 %v1768_v46 }
  0xbd   : > { %1530 = vmatmul.mubr.bf16.vlgmr.msra.gmra.mrb[8].mxu1 %v1770_v48  ;;  %2041 = vmatpush3.bf16.msra.mxu0 %v2270_v52 }
  0xbe   : > { %2063 = vmatpush3.bf16.msra.mxu1 %v2271_v53  ;;  %2042 = vmatprep.subr.bf16.mxu0 %v2272_v54 }
  0xbf   : > { %2064 = vmatprep.subr.bf16.mxu1 %v2273_v55  ;;  %1569 = vmatprep.mubr.bf16.mxu0 %v1773_v21 }
  0xc0   : > { %1609 = vmatprep.mubr.bf16.mxu1 %v1775_v23 }
  0xc1   : > { %2043 = vmatpush3.bf16.msra.mxu0 %v2274_v56 }
  0xc2   : > { %2065 = vmatpush3.bf16.msra.mxu1 %v2275_v57  ;;  %2044 = vmatprep.subr.bf16.mxu0 %v2276_v58 }
  0xc3   : > { %2066 = vmatprep.subr.bf16.mxu1 %v2277_v59 }
  0xc5   : > { %2045 = vmatpush3.bf16.msra.mxu0 %v2278_v60  ;;  %v1619_v60 = vlaneseq }
  0xc6   : > { %2067 = vmatpush3.bf16.msra.mxu1 %v2279_v61  ;;  %2046 = vmatprep.subr.bf16.mxu0 %v2280_v62 }
  0xc7   : > { %2068 = vmatprep.subr.bf16.mxu1 %v2281_v63 }
  0xc9   : > { %2047 = vmatpush3.bf16.msra.mxu0 %v2282_v0  ;;  %v1620_v0 = vshrl.u32 %v1619_v60, 7 }
  0xca   : > { %2069 = vmatpush3.bf16.msra.mxu1 %v2283_v1  ;;  %2048 = vmatprep.subr.bf16.mxu0 %v2284_v2 }
  0xcb   : > { %2070 = vmatprep.subr.bf16.mxu1 %v2285_v3  ;;  %vm1623_vm0 = vcmp.lt.s32.totalorder %v1620_v0, 6 }
  0xcd   : > { %2049 = vmatpush3.bf16.msra.mxu0 %v2286_v4 }
  0xce   : > { %2071 = vmatpush3.bf16.msra.mxu1 %v2287_v5  ;;  %2050 = vmatprep.subr.bf16.mxu0 %v2288_v6 }
  0xcf   : > { %2072 = vmatprep.subr.bf16.mxu1 %v2289_v7 }
  0xd1   : > { %2051 = vmatpush3.bf16.msra.mxu0 %v2290_v8 }
  0xd2   : > { %2073 = vmatpush3.bf16.msra.mxu1 %v2291_v9  ;;  %2052 = vmatprep.subr.bf16.mxu0 %v2292_v10 }
  0xd3   : > { %2074 = vmatprep.subr.bf16.mxu1 %v2293_v11 }
  0xd5   : > { %2053 = vmatpush3.bf16.msra.mxu0 %v2294_v12 }
  0xd6   : > { %2075 = vmatpush3.bf16.msra.mxu1 %v2295_v13  ;;  %2054 = vmatprep.subr.bf16.mxu0 %v2296_v14 }
  0xd7   : > { %2076 = vmatprep.subr.bf16.mxu1 %v2297_v15 }
  0xd9   : > { %2055 = vmatpush3.bf16.msra.mxu0 %v2298_v16  ;;  %v1627_v16 = vld [vmem:[#allocation2] sm:$0x1] }
  0xda   : > { %2077 = vmatpush3.bf16.msra.mxu1 %v2299_v17 }
  0xdc   : > { %1570 = vmatmul.mubr.bf16.vlgmr.msra.gmra.mrb[12].mxu0 %v1772_v20 }
  0xdd   : > { %1610 = vmatmul.mubr.bf16.vlgmr.msra.gmra.mrb[12].mxu1 %v1774_v22 }
 0x14f   : > { %v1924_v25 = vpop.f32.mrb[0].mxu0 }
 0x150   : > { %v1946_v26 = vpop.f32.mrb[0].mxu1  ;;  %v1925_v27 = vpop.f32.mrb[1].mxu0 }
 0x151   : > { %v1947_v28 = vpop.f32.mrb[1].mxu1  ;;  %v1926_v29 = vadd.f32 %v1925_v27, %v1924_v25  ;;  %v1927_v31 = vpop.f32.mrb[2].mxu0 }
 0x152   : > { %v1948_v30 = vadd.f32 %v1947_v28, %v1946_v26  ;;  %v1949_v32 = vpop.f32.mrb[2].mxu1  ;;  %v1928_v33 = vpop.f32.mrb[3].mxu0 }
 0x153   : > { %v1950_v34 = vpop.f32.mrb[3].mxu1 }
 0x154   : > { %v1372_v35 = vadd.f32 %v1948_v30, %v1926_v29 }
 0x16f   : > { %v1968_v36 = vpop.f32.mrb[4].mxu0 }
 0x170   : > { %v1990_v37 = vpop.f32.mrb[4].mxu1  ;;  %v1969_v38 = vpop.f32.mrb[5].mxu0 }
 0x171   : > { %v1991_v39 = vpop.f32.mrb[5].mxu1  ;;  %v1970_v40 = vadd.f32 %v1969_v38, %v1968_v36  ;;  %v1971_v42 = vpop.f32.mrb[6].mxu0 }
 0x172   : > { %v1992_v41 = vadd.f32 %v1991_v39, %v1990_v37  ;;  %v1993_v43 = vpop.f32.mrb[6].mxu1  ;;  %v1972_v44 = vpop.f32.mrb[7].mxu0 }
 0x173   : > { %v1994_v45 = vpop.f32.mrb[7].mxu1  ;;  %v1412_v46 = vadd.f32 %v1970_v40, %v1372_v35 }
 0x175   : > { %v1452_v47 = vadd.f32 %v1992_v41, %v1412_v46 }
 0x18f   : > { %v2012_v48 = vpop.f32.mrb[8].mxu0 }
 0x190   : > { %v2034_v49 = vpop.f32.mrb[8].mxu1  ;;  %v2013_v50 = vpop.f32.mrb[9].mxu0 }
 0x191   : > { %v2014_v51 = vadd.f32 %v2013_v50, %v2012_v48  ;;  %v2035_v52 = vpop.f32.mrb[9].mxu1  ;;  %v2015_v53 = vpop.f32.mrb[10].mxu0 }
 0x192   : > { %v2036_v54 = vadd.f32 %v2035_v52, %v2034_v49  ;;  %v2037_v55 = vpop.f32.mrb[10].mxu1  ;;  %v2016_v56 = vpop.f32.mrb[11].mxu0 }
 0x193   : > { %v1492_v57 = vadd.f32 %v2014_v51, %v1452_v47  ;;  %v2038_v58 = vpop.f32.mrb[11].mxu1 }
 0x195   : > { %v1532_v59 = vadd.f32 %v2036_v54, %v1492_v57 }
 0x1af   : > { %v2056_v61 = vpop.f32.mrb[12].mxu0 }
 0x1b0   : > { %v2078_v62 = vpop.f32.mrb[12].mxu1  ;;  %v2057_v63 = vpop.f32.mrb[13].mxu0 }
 0x1b1   : > { %v2058_v1 = vadd.f32 %v2057_v63, %v2056_v61  ;;  %v2079_v2 = vpop.f32.mrb[13].mxu1  ;;  %v2059_v3 = vpop.f32.mrb[14].mxu0 }
 0x1b2   : > { %v2080_v4 = vadd.f32 %v2079_v2, %v2078_v62  ;;  %v2081_v5 = vpop.f32.mrb[14].mxu1  ;;  %v2060_v6 = vpop.f32.mrb[15].mxu0 }
 0x1b3   : > { %v1572_v7 = vadd.f32 %v2058_v1, %v1532_v59  ;;  %v2082_v8 = vpop.f32.mrb[15].mxu1 }
 0x1b5   : > { %v1612_v9 = vadd.f32 %v2080_v4, %v1572_v7 }
 0x1b7   : > { %v1626_v10 = vsel %vm1623_vm0, %v1612_v9, -inf }
 0x1b8   : > { %v1628_v11 = vrot.slane %v1626_v10, 4 }
 0x1ba   : > { %v1629_v12 = vmax.f32 %v1626_v10, %v1628_v11 }
 0x1bc   : > { %v1630_v13 = vrot.slane %v1629_v12, 2 }
 0x1be   : > { %v1631_v14 = vmax.f32 %v1629_v12, %v1630_v13 }
 0x1c0   : > { %v1632_v15 = vrot.slane %v1631_v14, 1 }
 0x1c2   : > { %v1633_v17 = vmax.f32 %v1631_v14, %v1632_v15 }
 0x1c4   : > { %v1634_v18 = vmax.f32 %v1627_v16, %v1633_v17 }
 0x1c6   : > { %1635 = vst [vmem:[#allocation2] sm:$0x1] %v1634_v18 }
 0x1cd   : > { %v1639_v19 = vld [vmem:[#allocation2] sm:$0x1] }
 0x1ce   : > { %1640 = vst [vmem:[%s201_s19] sm:$0x1] %v1639_v19 }
 0x1cf   : > { %2375 = shalt.err (!%p2372_p5)
}
 0x1d0   : > { %s2376_s23 = scalar_lea.hbm %s2647_s6, 16  ;;  %s2380_s3 = scalar_lea.hbm %s2698_s2, 32 }
 0x1d1   : > { %p2377_p9 = scmp.ne.s32.totalorder %s2647_s6, %s2376_s23  ;;  %p2381_p7 = scmp.lt.u32.totalorder %s2647_s6, %s2698_s2 }
 0x1d2   : > { %p2382_p3 = scmp.lt.u32.totalorder %s2380_s3, %s2376_s23  ;;  %p2384_p4 = scmp.lt.u32.totalorder %s2376_s23, %s2647_s6 }
 0x1d3   : > { %p2378_p1 = pnand %p2377_p9, %p2567_p10 }
 0x1d4   : > { %p2383_p13 = por %p2382_p3, %p2381_p7 }
 0x1d5   : > { %p2379_p2 = pneg %p2378_p1 }
 0x1d6   : > { %p2385_p6 = por %p2384_p4, %p2383_p13 }
 0x1d8   : > { %p2386_p8 = pnand %p2385_p6, %p2379_p2 }
 0x1da   : > { %2389 = shalt.err (!%p2386_p8)
}
 0x1db   : > { %2090 = dma.vmem_to_hbm [thread:$0]  (%p2567_p10), %s2649_s21, 16, %s2647_s6, %s1642_s7  }
 0x1dc PF: > { %s1668_s15 = sand.u32 1, %s2428_s9   ;;  %p2716_p12 = scmp.ne.s32.totalorder %s2706_s20, 0 }
 0x1dd   : > { %p2717_p11 = scmp.ge.s32.totalorder %s2448_s14, 2  ;;  %s1669_s16 = scalar_lea.sflag [#allocation5], %s1668_s15 }
 0x1df   : > { %p2101_p0 = pnand %p2717_p11, %p2716_p12 }
 0x1e1   : > { %2423 = dma.done.wait (!%p2101_p0), %s1669_s16, 16  }
 0x1e2   : > { %2425 = vsyncadd (!%p2101_p0), %s1669_s16, 4294967280  ;;  %s19_s14 = sadd.s32 1, %s2448_s14   ;;  %s2718_s9 = smov %s2432_s10 }
 0x1e3   : > { %p16_p5 = scmp.ge.s32.totalorder %s19_s14, 4   ;;  %s2719_s10 = smov %s2436_s11 }
 0x1e4   : > { %s2720_s11 = smov %s2576_s28  ;;  %s2721_s12 = smov %s2444_s13 }
 0x1e5   : > { %s2722_s13 = smov %s2724_s25  ;;  %18 = sbr.rel (!%p16_p5) target bundleno = 7 (0x7), region = 85 }
 0x1ec   :  { %1673 = vsyncpa [#allocation4], 1 }
 0x1ed   :  { %1675 = vsyncpa [#allocation4 + $0x1], 1 }
 0x1ee   :  { %1676 = vsyncpa [#allocation7], 1 }
 0x1ef   :  { %1677 = vsyncpa [#allocation5], 1 }
 0x1f0   :  { %1679 = vsyncpa [#allocation5 + $0x1], 1 }

</bundles_post_ra>
